<compile_context>
chip_gen: v6e
topology: v6e:2x2x1
jax: 0.10.0
libtpu: 0.0.40
codegen_flags: <defaults>
</compile_context>

<pallas_src>
import jax
import jax.numpy as jnp
from jax.experimental import pallas as pl
from jax.experimental.pallas import tpu as pltpu

# ----------------------------- model sizes (small) --------------------------
VOCAB = 32
EMB = 16
HID = 32
LAYERS = 2
BATCH = 2
SEQ = 8


# ------------------------------- Pallas kernel ------------------------------
def _decoder_kernel(
    ids_ref,      # (S*B, 1) int32 token ids, time-major (row = t*B + b)
    wemb0_ref,    # (VOCAB, 3H)  embedding @ w_ih0   (folded offline)
    h_init_ref,   # (L, B, H) initial hidden state
    bih0_ref,     # (1, 3H)
    whh0_ref,     # (H, 3H)
    bhh0_ref,     # (1, 3H)
    wtop1_ref,    # (H, 4H)  [wih1_rz | wih1_n | 0]
    wbot1_ref,    # (H, 4H)  [whh1_rz | 0      | whh1_n]
    brz1_ref,     # (1, 2H)  b_ih1_rz + b_hh1_rz
    bin1_ref,     # (1, H)   b_ih1_n
    bhn1_ref,     # (1, H)   b_hh1_n
    wout_ref,     # (H, V)
    bout_ref,     # (1, V)
    out_ref,      # (S*B, V) time-major logits
    hfin_ref,     # (L, B, H) final hidden state
):
    N = ids_ref.shape[0]
    B = h_init_ref.shape[1]
    H = h_init_ref.shape[-1]
    S = N // B
    f32 = jnp.float32

    # ---- prologue: embedding lookup fused with the layer-0 input projection
    # (one one-hot matmul for all timesteps) ----------------------------------
    ids = ids_ref[...]                                             # (N, 1) int32
    vocab = wemb0_ref.shape[0]
    onehot = (jax.lax.broadcasted_iota(jnp.int32, (N, vocab), 1) == ids).astype(f32)
    gi0 = jnp.dot(onehot, wemb0_ref[...], preferred_element_type=f32) + bih0_ref[...]
    # gi0: (S*B, 3H), time-major rows -> per-step slices are contiguous sublanes

    whh0 = whh0_ref[...]
    bhh0 = bhh0_ref[...]
    wtop1 = wtop1_ref[...]
    wbot1 = wbot1_ref[...]
    brz1 = brz1_ref[...]
    bin1 = bin1_ref[...]
    bhn1 = bhn1_ref[...]

    h0 = h_init_ref[0]                                             # (B, H)
    h1 = h_init_ref[1]                                             # (B, H)

    # ---- recurrence: S is small & static -> fully unrolled, static slices ---
    h1_hist = []
    for t in range(S):
        gi0_t = gi0[t * B:(t + 1) * B, :]                          # (B, 3H) static slice

        # layer 0 (input gates precomputed; one hidden dot per step)
        gh0 = jnp.dot(h0, whh0, preferred_element_type=f32) + bhh0
        rz0 = jax.nn.sigmoid(gi0_t[:, :2 * H] + gh0[:, :2 * H])    # one EUP push
        r0 = rz0[:, :H]
        z0 = rz0[:, H:]
        n0 = jnp.tanh(gi0_t[:, 2 * H:] + r0 * gh0[:, 2 * H:])
        h0 = (1.0 - z0) * n0 + z0 * h0

        # layer 1: two (H, 4H) dots, no lane concat; 4H = 128 lane-dense.
        # Written as a single accumulating sum so Mosaic may keep the add in
        # the MXU result buffer on v7x.
        g1 = (jnp.dot(h0, wtop1, preferred_element_type=f32)
              + jnp.dot(h1, wbot1, preferred_element_type=f32))    # (B, 4H)
        rz1 = jax.nn.sigmoid(g1[:, :2 * H] + brz1)
        r1 = rz1[:, :H]
        z1 = rz1[:, H:]
        n1 = jnp.tanh(g1[:, 2 * H:3 * H] + bin1 + r1 * (g1[:, 3 * H:] + bhn1))
        h1 = (1.0 - z1) * n1 + z1 * h1
        h1_hist.append(h1)

    # ---- epilogue: time-major sublane stack, one batched projection, one store
    h1_seq = jnp.concatenate(h1_hist, axis=0)                      # (S*B, H)
    logits = jnp.dot(h1_seq, wout_ref[...], preferred_element_type=f32) + bout_ref[...]
    out_ref[...] = logits                                          # (S*B, V)
    hfin_ref[0] = h0
    hfin_ref[1] = h1


# ------------------------------ module wrapper -------------------------------
def fuse_params(params):
    """One-time weight prep (do this OUTSIDE the jitted forward):
       * fold embedding into the layer-0 input weight,
       * split layer-1 weights into zero-padded (H, 4H) top/bot halves
         (n-gate input/hidden kept separate for r * (gh_n + b_hn)),
       * pre-sum the layer-1 r/z biases."""
    H = HID
    hp = jax.lax.Precision.HIGHEST
    wih1, whh1 = params["w_ih1"], params["w_hh1"]
    zH = jnp.zeros((H, H), jnp.float32)
    fused = {
        "w_emb_ih0": jnp.dot(params["embedding"], params["w_ih0"], precision=hp),
        "b_ih0": params["b_ih0"],
        "w_hh0": params["w_hh0"],
        "b_hh0": params["b_hh0"],
        "w_top1": jnp.concatenate([wih1[:, :2 * H], wih1[:, 2 * H:], zH], axis=1),
        "w_bot1": jnp.concatenate([whh1[:, :2 * H], zH, whh1[:, 2 * H:]], axis=1),
        "b_rz1": params["b_ih1"][:, :2 * H] + params["b_hh1"][:, :2 * H],
        "b_in1": params["b_ih1"][:, 2 * H:],
        "b_hn1": params["b_hh1"][:, 2 * H:],
        "w_out": params["w_out"],
        "b_out": params["b_out"],
    }
    return fused


def decoder_forward(input_ids, hidden, fused):
    """PyTorch-equivalent forward (eval mode).

    input_ids: (B, S) int32 token ids
    hidden:    (L, B, H) float32
    fused:     params dict from fuse_params()
    returns:   logits (B, S, V), hidden (L, B, H)
    """
    B, S = input_ids.shape
    # time-major flattening: row = t*B + b (wrapper-side layout plumbing)
    ids_tm = jnp.transpose(input_ids).reshape(S * B, 1).astype(jnp.int32)

    vmem = pl.BlockSpec(memory_space=pltpu.MemorySpace.VMEM)
    out_shapes = (
        jax.ShapeDtypeStruct((S * B, VOCAB), jnp.float32),
        jax.ShapeDtypeStruct((LAYERS, B, HID), jnp.float32),
    )
    logits_tm, h_final = pl.pallas_call(
        _decoder_kernel,
        out_shape=out_shapes,
        in_specs=[vmem] * 13,
        out_specs=(vmem, vmem),
    )(
        ids_tm,
        fused["w_emb_ih0"],
        hidden,
        fused["b_ih0"], fused["w_hh0"], fused["b_hh0"],
        fused["w_top1"], fused["w_bot1"],
        fused["b_rz1"], fused["b_in1"], fused["b_hn1"],
        fused["w_out"], fused["b_out"],
    )
    logits = jnp.transpose(logits_tm.reshape(S, B, VOCAB), (1, 0, 2))   # (B, S, V)
    return logits, h_final


# ------------------------- deterministic parameter init ----------------------
def init_params(key):
    ks = jax.random.split(key, 12)
    s = 0.1
    p = {
        "embedding": jax.random.normal(ks[0], (VOCAB, EMB), jnp.float32) * s,
        # GRU layer 0: input EMB -> HID, gate order r,z,n, stored as (in, 3H)
        "w_ih0": jax.random.normal(ks[1], (EMB, 3 * HID), jnp.float32) * s,
        "w_hh0": jax.random.normal(ks[2], (HID, 3 * HID), jnp.float32) * s,
        "b_ih0": jax.random.normal(ks[3], (1, 3 * HID), jnp.float32) * s,
        "b_hh0": jax.random.normal(ks[4], (1, 3 * HID), jnp.float32) * s,
        # GRU layer 1: input HID -> HID
        "w_ih1": jax.random.normal(ks[5], (HID, 3 * HID), jnp.float32) * s,
        "w_hh1": jax.random.normal(ks[6], (HID, 3 * HID), jnp.float32) * s,
        "b_ih1": jax.random.normal(ks[7], (1, 3 * HID), jnp.float32) * s,
        "b_hh1": jax.random.normal(ks[8], (1, 3 * HID), jnp.float32) * s,
        # output Linear: HID -> VOCAB
        "w_out": jax.random.normal(ks[9], (HID, VOCAB), jnp.float32) * s,
        "b_out": jax.random.normal(ks[10], (1, VOCAB), jnp.float32) * s,
    }
    return p


# ------------------------------ pure-JAX reference ---------------------------
def reference_forward(input_ids, hidden, params):
    embedded = params["embedding"][input_ids]             # (B, S, E)
    x_tm = jnp.transpose(embedded, (1, 0, 2))             # (S, B, E)

    def cell(x, h, wih, whh, bih, bhh):
        gi = x @ wih + bih
        gh = h @ whh + bhh
        r = jax.nn.sigmoid(gi[:, :HID] + gh[:, :HID])
        z = jax.nn.sigmoid(gi[:, HID:2 * HID] + gh[:, HID:2 * HID])
        n = jnp.tanh(gi[:, 2 * HID:] + r * gh[:, 2 * HID:])
        return (1.0 - z) * n + z * h

    def step(carry, x):
        h0, h1 = carry
        h0n = cell(x, h0, params["w_ih0"], params["w_hh0"],
                   params["b_ih0"], params["b_hh0"])
        h1n = cell(h0n, h1, params["w_ih1"], params["w_hh1"],
                   params["b_ih1"], params["b_hh1"])
        y = h1n @ params["w_out"] + params["b_out"]
        return (h0n, h1n), y

    (h0f, h1f), ys = jax.lax.scan(step, (hidden[0], hidden[1]), x_tm)
    logits = jnp.transpose(ys, (1, 0, 2))                 # (B, S, V)
    return logits, jnp.stack([h0f, h1f], axis=0)


# ------------------------------------ main ------------------------------------
if __name__ == "__main__":
    key = jax.random.PRNGKey(0)
    pkey, ikey, hkey = jax.random.split(key, 3)

    params = init_params(pkey)
    fused = fuse_params(params)          # one-time weight prep, outside jit
    input_ids = jax.random.randint(ikey, (BATCH, SEQ), 0, VOCAB, dtype=jnp.int32)
    hidden0 = jax.random.normal(hkey, (LAYERS, BATCH, HID), jnp.float32)

    fwd = jax.jit(decoder_forward)
    logits, hidden_out = fwd(input_ids, hidden0, fused)
    jax.block_until_ready((logits, hidden_out))

    ref_logits, ref_hidden = reference_forward(input_ids, hidden0, params)
    assert logits.shape == (BATCH, SEQ, VOCAB)
    assert hidden_out.shape == (LAYERS, BATCH, HID)
    assert jnp.allclose(logits, ref_logits, atol=1e-4, rtol=1e-4)
    assert jnp.allclose(hidden_out, ref_hidden, atol=1e-4, rtol=1e-4)

    print("KERNEL_OK")
</pallas_src>

<mosaic_0001>
module attributes {stable_mosaic.version = 11 : i64} {
  func.func @_decoder_kernel(%arg0: memref<16x1xi32, #tpu.memory_space<vmem>>, %arg1: memref<32x96xf32, #tpu.memory_space<vmem>>, %arg2: memref<2x2x32xf32, #tpu.memory_space<vmem>>, %arg3: memref<1x96xf32, #tpu.memory_space<vmem>>, %arg4: memref<32x96xf32, #tpu.memory_space<vmem>>, %arg5: memref<1x96xf32, #tpu.memory_space<vmem>>, %arg6: memref<32x128xf32, #tpu.memory_space<vmem>>, %arg7: memref<32x128xf32, #tpu.memory_space<vmem>>, %arg8: memref<1x64xf32, #tpu.memory_space<vmem>>, %arg9: memref<1x32xf32, #tpu.memory_space<vmem>>, %arg10: memref<1x32xf32, #tpu.memory_space<vmem>>, %arg11: memref<32x32xf32, #tpu.memory_space<vmem>>, %arg12: memref<1x32xf32, #tpu.memory_space<vmem>>, %arg13: memref<16x32xf32, #tpu.memory_space<vmem>>, %arg14: memref<2x2x32xf32, #tpu.memory_space<vmem>>) attributes {dimension_semantics = [], scalar_prefetch = 0 : i64, scratch_operands = 0 : i64, tpu.core_type = #tpu.core_type<tc>} {
    %c0 = arith.constant 0 : index
    %c0_0 = arith.constant 0 : index
    %0 = vector.load %arg0[%c0, %c0_0] : memref<16x1xi32, #tpu.memory_space<vmem>>, vector<16x1xi32>
    %1 = tpu.iota {dimensions = array<i32: 1>} : vector<16x32xi32>
    %2 = vector.broadcast %0 : vector<16x1xi32> to vector<16x32xi32>
    %3 = arith.cmpi eq, %1, %2 : vector<16x32xi32>
    %4 = arith.extui %3 : vector<16x32xi1> to vector<16x32xi32>
    %5 = arith.sitofp %4 : vector<16x32xi32> to vector<16x32xf32>
    %c0_1 = arith.constant 0 : index
    %c0_2 = arith.constant 0 : index
    %6 = vector.load %arg1[%c0_1, %c0_2] : memref<32x96xf32, #tpu.memory_space<vmem>>, vector<32x96xf32>
    %cst = arith.constant dense<0.000000e+00> : vector<16x96xf32>
    %7 = tpu.matmul %5, %6, %cst {dimension_numbers = #tpu.dot_dimension_numbers<[1], [0], [0], [1], [0, 0, 1, 1], [], []>} : vector<16x32xf32>, vector<32x96xf32>, vector<16x96xf32> -> vector<16x96xf32>
    %c0_3 = arith.constant 0 : index
    %c0_4 = arith.constant 0 : index
    %8 = vector.load %arg3[%c0_3, %c0_4] : memref<1x96xf32, #tpu.memory_space<vmem>>, vector<1x96xf32>
    %9 = vector.broadcast %8 : vector<1x96xf32> to vector<16x96xf32>
    %10 = arith.addf %7, %9 : vector<16x96xf32>
    %c0_5 = arith.constant 0 : index
    %c0_6 = arith.constant 0 : index
    %11 = vector.load %arg4[%c0_5, %c0_6] : memref<32x96xf32, #tpu.memory_space<vmem>>, vector<32x96xf32>
    %c0_7 = arith.constant 0 : index
    %c0_8 = arith.constant 0 : index
    %12 = vector.load %arg5[%c0_7, %c0_8] : memref<1x96xf32, #tpu.memory_space<vmem>>, vector<1x96xf32>
    %c0_9 = arith.constant 0 : index
    %c0_10 = arith.constant 0 : index
    %13 = vector.load %arg6[%c0_9, %c0_10] : memref<32x128xf32, #tpu.memory_space<vmem>>, vector<32x128xf32>
    %c0_11 = arith.constant 0 : index
    %c0_12 = arith.constant 0 : index
    %14 = vector.load %arg7[%c0_11, %c0_12] : memref<32x128xf32, #tpu.memory_space<vmem>>, vector<32x128xf32>
    %c0_13 = arith.constant 0 : index
    %c0_14 = arith.constant 0 : index
    %15 = vector.load %arg8[%c0_13, %c0_14] : memref<1x64xf32, #tpu.memory_space<vmem>>, vector<1x64xf32>
    %c0_15 = arith.constant 0 : index
    %c0_16 = arith.constant 0 : index
    %16 = vector.load %arg9[%c0_15, %c0_16] : memref<1x32xf32, #tpu.memory_space<vmem>>, vector<1x32xf32>
    %c0_17 = arith.constant 0 : index
    %c0_18 = arith.constant 0 : index
    %17 = vector.load %arg10[%c0_17, %c0_18] : memref<1x32xf32, #tpu.memory_space<vmem>>, vector<1x32xf32>
    %c0_19 = arith.constant 0 : index
    %c0_20 = arith.constant 0 : index
    %c0_21 = arith.constant 0 : index
    %18 = vector.load %arg2[%c0_19, %c0_20, %c0_21] : memref<2x2x32xf32, #tpu.memory_space<vmem>>, vector<1x2x32xf32>
    %19 = vector.shape_cast %18 : vector<1x2x32xf32> to vector<2x32xf32>
    %c1 = arith.constant 1 : index
    %c0_22 = arith.constant 0 : index
    %c0_23 = arith.constant 0 : index
    %20 = vector.load %arg2[%c1, %c0_22, %c0_23] : memref<2x2x32xf32, #tpu.memory_space<vmem>>, vector<1x2x32xf32>
    %21 = vector.shape_cast %20 : vector<1x2x32xf32> to vector<2x32xf32>
    %22 = vector.extract_strided_slice %10 {offsets = [0, 0], sizes = [2, 96], strides = [1, 1]} : vector<16x96xf32> to vector<2x96xf32>
    %cst_24 = arith.constant dense<0.000000e+00> : vector<2x96xf32>
    %23 = tpu.matmul %19, %11, %cst_24 {dimension_numbers = #tpu.dot_dimension_numbers<[1], [0], [0], [1], [0, 0, 1, 1], [], []>} : vector<2x32xf32>, vector<32x96xf32>, vector<2x96xf32> -> vector<2x96xf32>
    %24 = vector.broadcast %12 : vector<1x96xf32> to vector<2x96xf32>
    %25 = arith.addf %23, %24 : vector<2x96xf32>
    %26 = vector.extract_strided_slice %22 {offsets = [0, 0], sizes = [2, 64], strides = [1, 1]} : vector<2x96xf32> to vector<2x64xf32>
    %27 = vector.extract_strided_slice %25 {offsets = [0, 0], sizes = [2, 64], strides = [1, 1]} : vector<2x96xf32> to vector<2x64xf32>
    %28 = arith.addf %26, %27 : vector<2x64xf32>
    %29 = arith.negf %28 : vector<2x64xf32>
    %30 = math.exp %29 : vector<2x64xf32>
    %cst_25 = arith.constant 1.000000e+00 : f32
    %31 = vector.broadcast %cst_25 : f32 to vector<2x64xf32>
    %32 = arith.addf %31, %30 : vector<2x64xf32>
    %33 = arith.divf %31, %32 : vector<2x64xf32>
    %34 = vector.extract_strided_slice %33 {offsets = [0, 0], sizes = [2, 32], strides = [1, 1]} : vector<2x64xf32> to vector<2x32xf32>
    %35 = vector.extract_strided_slice %33 {offsets = [0, 32], sizes = [2, 32], strides = [1, 1]} : vector<2x64xf32> to vector<2x32xf32>
    %36 = vector.extract_strided_slice %22 {offsets = [0, 64], sizes = [2, 32], strides = [1, 1]} : vector<2x96xf32> to vector<2x32xf32>
    %37 = vector.extract_strided_slice %25 {offsets = [0, 64], sizes = [2, 32], strides = [1, 1]} : vector<2x96xf32> to vector<2x32xf32>
    %38 = arith.mulf %34, %37 : vector<2x32xf32>
    %39 = arith.addf %36, %38 : vector<2x32xf32>
    %40 = math.tanh %39 : vector<2x32xf32>
    %cst_26 = arith.constant 1.000000e+00 : f32
    %41 = vector.broadcast %cst_26 : f32 to vector<2x32xf32>
    %42 = arith.subf %41, %35 : vector<2x32xf32>
    %43 = arith.mulf %42, %40 : vector<2x32xf32>
    %44 = arith.mulf %35, %19 : vector<2x32xf32>
    %45 = arith.addf %43, %44 : vector<2x32xf32>
    %cst_27 = arith.constant dense<0.000000e+00> : vector<2x128xf32>
    %46 = tpu.matmul %45, %13, %cst_27 {dimension_numbers = #tpu.dot_dimension_numbers<[1], [0], [0], [1], [0, 0, 1, 1], [], []>} : vector<2x32xf32>, vector<32x128xf32>, vector<2x128xf32> -> vector<2x128xf32>
    %cst_28 = arith.constant dense<0.000000e+00> : vector<2x128xf32>
    %47 = tpu.matmul %21, %14, %cst_28 {dimension_numbers = #tpu.dot_dimension_numbers<[1], [0], [0], [1], [0, 0, 1, 1], [], []>} : vector<2x32xf32>, vector<32x128xf32>, vector<2x128xf32> -> vector<2x128xf32>
    %48 = arith.addf %46, %47 : vector<2x128xf32>
    %49 = vector.extract_strided_slice %48 {offsets = [0, 0], sizes = [2, 64], strides = [1, 1]} : vector<2x128xf32> to vector<2x64xf32>
    %50 = vector.broadcast %15 : vector<1x64xf32> to vector<2x64xf32>
    %51 = arith.addf %49, %50 : vector<2x64xf32>
    %52 = arith.negf %51 : vector<2x64xf32>
    %53 = math.exp %52 : vector<2x64xf32>
    %cst_29 = arith.constant 1.000000e+00 : f32
    %54 = vector.broadcast %cst_29 : f32 to vector<2x64xf32>
    %55 = arith.addf %54, %53 : vector<2x64xf32>
    %56 = arith.divf %54, %55 : vector<2x64xf32>
    %57 = vector.extract_strided_slice %56 {offsets = [0, 0], sizes = [2, 32], strides = [1, 1]} : vector<2x64xf32> to vector<2x32xf32>
    %58 = vector.extract_strided_slice %56 {offsets = [0, 32], sizes = [2, 32], strides = [1, 1]} : vector<2x64xf32> to vector<2x32xf32>
    %59 = vector.extract_strided_slice %48 {offsets = [0, 64], sizes = [2, 32], strides = [1, 1]} : vector<2x128xf32> to vector<2x32xf32>
    %60 = vector.broadcast %16 : vector<1x32xf32> to vector<2x32xf32>
    %61 = arith.addf %59, %60 : vector<2x32xf32>
    %62 = vector.extract_strided_slice %48 {offsets = [0, 96], sizes = [2, 32], strides = [1, 1]} : vector<2x128xf32> to vector<2x32xf32>
    %63 = vector.broadcast %17 : vector<1x32xf32> to vector<2x32xf32>
    %64 = arith.addf %62, %63 : vector<2x32xf32>
    %65 = arith.mulf %57, %64 : vector<2x32xf32>
    %66 = arith.addf %61, %65 : vector<2x32xf32>
    %67 = math.tanh %66 : vector<2x32xf32>
    %cst_30 = arith.constant 1.000000e+00 : f32
    %68 = vector.broadcast %cst_30 : f32 to vector<2x32xf32>
    %69 = arith.subf %68, %58 : vector<2x32xf32>
    %70 = arith.mulf %69, %67 : vector<2x32xf32>
    %71 = arith.mulf %58, %21 : vector<2x32xf32>
    %72 = arith.addf %70, %71 : vector<2x32xf32>
    %73 = vector.extract_strided_slice %10 {offsets = [2, 0], sizes = [2, 96], strides = [1, 1]} : vector<16x96xf32> to vector<2x96xf32>
    %cst_31 = arith.constant dense<0.000000e+00> : vector<2x96xf32>
    %74 = tpu.matmul %45, %11, %cst_31 {dimension_numbers = #tpu.dot_dimension_numbers<[1], [0], [0], [1], [0, 0, 1, 1], [], []>} : vector<2x32xf32>, vector<32x96xf32>, vector<2x96xf32> -> vector<2x96xf32>
    %75 = vector.broadcast %12 : vector<1x96xf32> to vector<2x96xf32>
    %76 = arith.addf %74, %75 : vector<2x96xf32>
    %77 = vector.extract_strided_slice %73 {offsets = [0, 0], sizes = [2, 64], strides = [1, 1]} : vector<2x96xf32> to vector<2x64xf32>
    %78 = vector.extract_strided_slice %76 {offsets = [0, 0], sizes = [2, 64], strides = [1, 1]} : vector<2x96xf32> to vector<2x64xf32>
    %79 = arith.addf %77, %78 : vector<2x64xf32>
    %80 = arith.negf %79 : vector<2x64xf32>
    %81 = math.exp %80 : vector<2x64xf32>
    %cst_32 = arith.constant 1.000000e+00 : f32
    %82 = vector.broadcast %cst_32 : f32 to vector<2x64xf32>
    %83 = arith.addf %82, %81 : vector<2x64xf32>
    %84 = arith.divf %82, %83 : vector<2x64xf32>
    %85 = vector.extract_strided_slice %84 {offsets = [0, 0], sizes = [2, 32], strides = [1, 1]} : vector<2x64xf32> to vector<2x32xf32>
    %86 = vector.extract_strided_slice %84 {offsets = [0, 32], sizes = [2, 32], strides = [1, 1]} : vector<2x64xf32> to vector<2x32xf32>
    %87 = vector.extract_strided_slice %73 {offsets = [0, 64], sizes = [2, 32], strides = [1, 1]} : vector<2x96xf32> to vector<2x32xf32>
    %88 = vector.extract_strided_slice %76 {offsets = [0, 64], sizes = [2, 32], strides = [1, 1]} : vector<2x96xf32> to vector<2x32xf32>
    %89 = arith.mulf %85, %88 : vector<2x32xf32>
    %90 = arith.addf %87, %89 : vector<2x32xf32>
    %91 = math.tanh %90 : vector<2x32xf32>
    %cst_33 = arith.constant 1.000000e+00 : f32
    %92 = vector.broadcast %cst_33 : f32 to vector<2x32xf32>
    %93 = arith.subf %92, %86 : vector<2x32xf32>
    %94 = arith.mulf %93, %91 : vector<2x32xf32>
    %95 = arith.mulf %86, %45 : vector<2x32xf32>
    %96 = arith.addf %94, %95 : vector<2x32xf32>
    %cst_34 = arith.constant dense<0.000000e+00> : vector<2x128xf32>
    %97 = tpu.matmul %96, %13, %cst_34 {dimension_numbers = #tpu.dot_dimension_numbers<[1], [0], [0], [1], [0, 0, 1, 1], [], []>} : vector<2x32xf32>, vector<32x128xf32>, vector<2x128xf32> -> vector<2x128xf32>
    %cst_35 = arith.constant dense<0.000000e+00> : vector<2x128xf32>
    %98 = tpu.matmul %72, %14, %cst_35 {dimension_numbers = #tpu.dot_dimension_numbers<[1], [0], [0], [1], [0, 0, 1, 1], [], []>} : vector<2x32xf32>, vector<32x128xf32>, vector<2x128xf32> -> vector<2x128xf32>
    %99 = arith.addf %97, %98 : vector<2x128xf32>
    %100 = vector.extract_strided_slice %99 {offsets = [0, 0], sizes = [2, 64], strides = [1, 1]} : vector<2x128xf32> to vector<2x64xf32>
    %101 = vector.broadcast %15 : vector<1x64xf32> to vector<2x64xf32>
    %102 = arith.addf %100, %101 : vector<2x64xf32>
    %103 = arith.negf %102 : vector<2x64xf32>
    %104 = math.exp %103 : vector<2x64xf32>
    %cst_36 = arith.constant 1.000000e+00 : f32
    %105 = vector.broadcast %cst_36 : f32 to vector<2x64xf32>
    %106 = arith.addf %105, %104 : vector<2x64xf32>
    %107 = arith.divf %105, %106 : vector<2x64xf32>
    %108 = vector.extract_strided_slice %107 {offsets = [0, 0], sizes = [2, 32], strides = [1, 1]} : vector<2x64xf32> to vector<2x32xf32>
    %109 = vector.extract_strided_slice %107 {offsets = [0, 32], sizes = [2, 32], strides = [1, 1]} : vector<2x64xf32> to vector<2x32xf32>
    %110 = vector.extract_strided_slice %99 {offsets = [0, 64], sizes = [2, 32], strides = [1, 1]} : vector<2x128xf32> to vector<2x32xf32>
    %111 = vector.broadcast %16 : vector<1x32xf32> to vector<2x32xf32>
    %112 = arith.addf %110, %111 : vector<2x32xf32>
    %113 = vector.extract_strided_slice %99 {offsets = [0, 96], sizes = [2, 32], strides = [1, 1]} : vector<2x128xf32> to vector<2x32xf32>
    %114 = vector.broadcast %17 : vector<1x32xf32> to vector<2x32xf32>
    %115 = arith.addf %113, %114 : vector<2x32xf32>
    %116 = arith.mulf %108, %115 : vector<2x32xf32>
    %117 = arith.addf %112, %116 : vector<2x32xf32>
    %118 = math.tanh %117 : vector<2x32xf32>
    %cst_37 = arith.constant 1.000000e+00 : f32
    %119 = vector.broadcast %cst_37 : f32 to vector<2x32xf32>
    %120 = arith.subf %119, %109 : vector<2x32xf32>
    %121 = arith.mulf %120, %118 : vector<2x32xf32>
    %122 = arith.mulf %109, %72 : vector<2x32xf32>
    %123 = arith.addf %121, %122 : vector<2x32xf32>
    %124 = vector.extract_strided_slice %10 {offsets = [4, 0], sizes = [2, 96], strides = [1, 1]} : vector<16x96xf32> to vector<2x96xf32>
    %cst_38 = arith.constant dense<0.000000e+00> : vector<2x96xf32>
    %125 = tpu.matmul %96, %11, %cst_38 {dimension_numbers = #tpu.dot_dimension_numbers<[1], [0], [0], [1], [0, 0, 1, 1], [], []>} : vector<2x32xf32>, vector<32x96xf32>, vector<2x96xf32> -> vector<2x96xf32>
    %126 = vector.broadcast %12 : vector<1x96xf32> to vector<2x96xf32>
    %127 = arith.addf %125, %126 : vector<2x96xf32>
    %128 = vector.extract_strided_slice %124 {offsets = [0, 0], sizes = [2, 64], strides = [1, 1]} : vector<2x96xf32> to vector<2x64xf32>
    %129 = vector.extract_strided_slice %127 {offsets = [0, 0], sizes = [2, 64], strides = [1, 1]} : vector<2x96xf32> to vector<2x64xf32>
    %130 = arith.addf %128, %129 : vector<2x64xf32>
    %131 = arith.negf %130 : vector<2x64xf32>
    %132 = math.exp %131 : vector<2x64xf32>
    %cst_39 = arith.constant 1.000000e+00 : f32
    %133 = vector.broadcast %cst_39 : f32 to vector<2x64xf32>
    %134 = arith.addf %133, %132 : vector<2x64xf32>
    %135 = arith.divf %133, %134 : vector<2x64xf32>
    %136 = vector.extract_strided_slice %135 {offsets = [0, 0], sizes = [2, 32], strides = [1, 1]} : vector<2x64xf32> to vector<2x32xf32>
    %137 = vector.extract_strided_slice %135 {offsets = [0, 32], sizes = [2, 32], strides = [1, 1]} : vector<2x64xf32> to vector<2x32xf32>
    %138 = vector.extract_strided_slice %124 {offsets = [0, 64], sizes = [2, 32], strides = [1, 1]} : vector<2x96xf32> to vector<2x32xf32>
    %139 = vector.extract_strided_slice %127 {offsets = [0, 64], sizes = [2, 32], strides = [1, 1]} : vector<2x96xf32> to vector<2x32xf32>
    %140 = arith.mulf %136, %139 : vector<2x32xf32>
    %141 = arith.addf %138, %140 : vector<2x32xf32>
    %142 = math.tanh %141 : vector<2x32xf32>
    %cst_40 = arith.constant 1.000000e+00 : f32
    %143 = vector.broadcast %cst_40 : f32 to vector<2x32xf32>
    %144 = arith.subf %143, %137 : vector<2x32xf32>
    %145 = arith.mulf %144, %142 : vector<2x32xf32>
    %146 = arith.mulf %137, %96 : vector<2x32xf32>
    %147 = arith.addf %145, %146 : vector<2x32xf32>
    %cst_41 = arith.constant dense<0.000000e+00> : vector<2x128xf32>
    %148 = tpu.matmul %147, %13, %cst_41 {dimension_numbers = #tpu.dot_dimension_numbers<[1], [0], [0], [1], [0, 0, 1, 1], [], []>} : vector<2x32xf32>, vector<32x128xf32>, vector<2x128xf32> -> vector<2x128xf32>
    %cst_42 = arith.constant dense<0.000000e+00> : vector<2x128xf32>
    %149 = tpu.matmul %123, %14, %cst_42 {dimension_numbers = #tpu.dot_dimension_numbers<[1], [0], [0], [1], [0, 0, 1, 1], [], []>} : vector<2x32xf32>, vector<32x128xf32>, vector<2x128xf32> -> vector<2x128xf32>
    %150 = arith.addf %148, %149 : vector<2x128xf32>
    %151 = vector.extract_strided_slice %150 {offsets = [0, 0], sizes = [2, 64], strides = [1, 1]} : vector<2x128xf32> to vector<2x64xf32>
    %152 = vector.broadcast %15 : vector<1x64xf32> to vector<2x64xf32>
    %153 = arith.addf %151, %152 : vector<2x64xf32>
    %154 = arith.negf %153 : vector<2x64xf32>
    %155 = math.exp %154 : vector<2x64xf32>
    %cst_43 = arith.constant 1.000000e+00 : f32
    %156 = vector.broadcast %cst_43 : f32 to vector<2x64xf32>
    %157 = arith.addf %156, %155 : vector<2x64xf32>
    %158 = arith.divf %156, %157 : vector<2x64xf32>
    %159 = vector.extract_strided_slice %158 {offsets = [0, 0], sizes = [2, 32], strides = [1, 1]} : vector<2x64xf32> to vector<2x32xf32>
    %160 = vector.extract_strided_slice %158 {offsets = [0, 32], sizes = [2, 32], strides = [1, 1]} : vector<2x64xf32> to vector<2x32xf32>
    %161 = vector.extract_strided_slice %150 {offsets = [0, 64], sizes = [2, 32], strides = [1, 1]} : vector<2x128xf32> to vector<2x32xf32>
    %162 = vector.broadcast %16 : vector<1x32xf32> to vector<2x32xf32>
    %163 = arith.addf %161, %162 : vector<2x32xf32>
    %164 = vector.extract_strided_slice %150 {offsets = [0, 96], sizes = [2, 32], strides = [1, 1]} : vector<2x128xf32> to vector<2x32xf32>
    %165 = vector.broadcast %17 : vector<1x32xf32> to vector<2x32xf32>
    %166 = arith.addf %164, %165 : vector<2x32xf32>
    %167 = arith.mulf %159, %166 : vector<2x32xf32>
    %168 = arith.addf %163, %167 : vector<2x32xf32>
    %169 = math.tanh %168 : vector<2x32xf32>
    %cst_44 = arith.constant 1.000000e+00 : f32
    %170 = vector.broadcast %cst_44 : f32 to vector<2x32xf32>
    %171 = arith.subf %170, %160 : vector<2x32xf32>
    %172 = arith.mulf %171, %169 : vector<2x32xf32>
    %173 = arith.mulf %160, %123 : vector<2x32xf32>
    %174 = arith.addf %172, %173 : vector<2x32xf32>
    %175 = vector.extract_strided_slice %10 {offsets = [6, 0], sizes = [2, 96], strides = [1, 1]} : vector<16x96xf32> to vector<2x96xf32>
    %cst_45 = arith.constant dense<0.000000e+00> : vector<2x96xf32>
    %176 = tpu.matmul %147, %11, %cst_45 {dimension_numbers = #tpu.dot_dimension_numbers<[1], [0], [0], [1], [0, 0, 1, 1], [], []>} : vector<2x32xf32>, vector<32x96xf32>, vector<2x96xf32> -> vector<2x96xf32>
    %177 = vector.broadcast %12 : vector<1x96xf32> to vector<2x96xf32>
    %178 = arith.addf %176, %177 : vector<2x96xf32>
    %179 = vector.extract_strided_slice %175 {offsets = [0, 0], sizes = [2, 64], strides = [1, 1]} : vector<2x96xf32> to vector<2x64xf32>
    %180 = vector.extract_strided_slice %178 {offsets = [0, 0], sizes = [2, 64], strides = [1, 1]} : vector<2x96xf32> to vector<2x64xf32>
    %181 = arith.addf %179, %180 : vector<2x64xf32>
    %182 = arith.negf %181 : vector<2x64xf32>
    %183 = math.exp %182 : vector<2x64xf32>
    %cst_46 = arith.constant 1.000000e+00 : f32
    %184 = vector.broadcast %cst_46 : f32 to vector<2x64xf32>
    %185 = arith.addf %184, %183 : vector<2x64xf32>
    %186 = arith.divf %184, %185 : vector<2x64xf32>
    %187 = vector.extract_strided_slice %186 {offsets = [0, 0], sizes = [2, 32], strides = [1, 1]} : vector<2x64xf32> to vector<2x32xf32>
    %188 = vector.extract_strided_slice %186 {offsets = [0, 32], sizes = [2, 32], strides = [1, 1]} : vector<2x64xf32> to vector<2x32xf32>
    %189 = vector.extract_strided_slice %175 {offsets = [0, 64], sizes = [2, 32], strides = [1, 1]} : vector<2x96xf32> to vector<2x32xf32>
    %190 = vector.extract_strided_slice %178 {offsets = [0, 64], sizes = [2, 32], strides = [1, 1]} : vector<2x96xf32> to vector<2x32xf32>
    %191 = arith.mulf %187, %190 : vector<2x32xf32>
    %192 = arith.addf %189, %191 : vector<2x32xf32>
    %193 = math.tanh %192 : vector<2x32xf32>
    %cst_47 = arith.constant 1.000000e+00 : f32
    %194 = vector.broadcast %cst_47 : f32 to vector<2x32xf32>
    %195 = arith.subf %194, %188 : vector<2x32xf32>
    %196 = arith.mulf %195, %193 : vector<2x32xf32>
    %197 = arith.mulf %188, %147 : vector<2x32xf32>
    %198 = arith.addf %196, %197 : vector<2x32xf32>
    %cst_48 = arith.constant dense<0.000000e+00> : vector<2x128xf32>
    %199 = tpu.matmul %198, %13, %cst_48 {dimension_numbers = #tpu.dot_dimension_numbers<[1], [0], [0], [1], [0, 0, 1, 1], [], []>} : vector<2x32xf32>, vector<32x128xf32>, vector<2x128xf32> -> vector<2x128xf32>
    %cst_49 = arith.constant dense<0.000000e+00> : vector<2x128xf32>
    %200 = tpu.matmul %174, %14, %cst_49 {dimension_numbers = #tpu.dot_dimension_numbers<[1], [0], [0], [1], [0, 0, 1, 1], [], []>} : vector<2x32xf32>, vector<32x128xf32>, vector<2x128xf32> -> vector<2x128xf32>
    %201 = arith.addf %199, %200 : vector<2x128xf32>
    %202 = vector.extract_strided_slice %201 {offsets = [0, 0], sizes = [2, 64], strides = [1, 1]} : vector<2x128xf32> to vector<2x64xf32>
    %203 = vector.broadcast %15 : vector<1x64xf32> to vector<2x64xf32>
    %204 = arith.addf %202, %203 : vector<2x64xf32>
    %205 = arith.negf %204 : vector<2x64xf32>
    %206 = math.exp %205 : vector<2x64xf32>
    %cst_50 = arith.constant 1.000000e+00 : f32
    %207 = vector.broadcast %cst_50 : f32 to vector<2x64xf32>
    %208 = arith.addf %207, %206 : vector<2x64xf32>
    %209 = arith.divf %207, %208 : vector<2x64xf32>
    %210 = vector.extract_strided_slice %209 {offsets = [0, 0], sizes = [2, 32], strides = [1, 1]} : vector<2x64xf32> to vector<2x32xf32>
    %211 = vector.extract_strided_slice %209 {offsets = [0, 32], sizes = [2, 32], strides = [1, 1]} : vector<2x64xf32> to vector<2x32xf32>
    %212 = vector.extract_strided_slice %201 {offsets = [0, 64], sizes = [2, 32], strides = [1, 1]} : vector<2x128xf32> to vector<2x32xf32>
    %213 = vector.broadcast %16 : vector<1x32xf32> to vector<2x32xf32>
    %214 = arith.addf %212, %213 : vector<2x32xf32>
    %215 = vector.extract_strided_slice %201 {offsets = [0, 96], sizes = [2, 32], strides = [1, 1]} : vector<2x128xf32> to vector<2x32xf32>
    %216 = vector.broadcast %17 : vector<1x32xf32> to vector<2x32xf32>
    %217 = arith.addf %215, %216 : vector<2x32xf32>
    %218 = arith.mulf %210, %217 : vector<2x32xf32>
    %219 = arith.addf %214, %218 : vector<2x32xf32>
    %220 = math.tanh %219 : vector<2x32xf32>
    %cst_51 = arith.constant 1.000000e+00 : f32
    %221 = vector.broadcast %cst_51 : f32 to vector<2x32xf32>
    %222 = arith.subf %221, %211 : vector<2x32xf32>
    %223 = arith.mulf %222, %220 : vector<2x32xf32>
    %224 = arith.mulf %211, %174 : vector<2x32xf32>
    %225 = arith.addf %223, %224 : vector<2x32xf32>
    %226 = vector.extract_strided_slice %10 {offsets = [8, 0], sizes = [2, 96], strides = [1, 1]} : vector<16x96xf32> to vector<2x96xf32>
    %cst_52 = arith.constant dense<0.000000e+00> : vector<2x96xf32>
    %227 = tpu.matmul %198, %11, %cst_52 {dimension_numbers = #tpu.dot_dimension_numbers<[1], [0], [0], [1], [0, 0, 1, 1], [], []>} : vector<2x32xf32>, vector<32x96xf32>, vector<2x96xf32> -> vector<2x96xf32>
    %228 = vector.broadcast %12 : vector<1x96xf32> to vector<2x96xf32>
    %229 = arith.addf %227, %228 : vector<2x96xf32>
    %230 = vector.extract_strided_slice %226 {offsets = [0, 0], sizes = [2, 64], strides = [1, 1]} : vector<2x96xf32> to vector<2x64xf32>
    %231 = vector.extract_strided_slice %229 {offsets = [0, 0], sizes = [2, 64], strides = [1, 1]} : vector<2x96xf32> to vector<2x64xf32>
    %232 = arith.addf %230, %231 : vector<2x64xf32>
    %233 = arith.negf %232 : vector<2x64xf32>
    %234 = math.exp %233 : vector<2x64xf32>
    %cst_53 = arith.constant 1.000000e+00 : f32
    %235 = vector.broadcast %cst_53 : f32 to vector<2x64xf32>
    %236 = arith.addf %235, %234 : vector<2x64xf32>
    %237 = arith.divf %235, %236 : vector<2x64xf32>
    %238 = vector.extract_strided_slice %237 {offsets = [0, 0], sizes = [2, 32], strides = [1, 1]} : vector<2x64xf32> to vector<2x32xf32>
    %239 = vector.extract_strided_slice %237 {offsets = [0, 32], sizes = [2, 32], strides = [1, 1]} : vector<2x64xf32> to vector<2x32xf32>
    %240 = vector.extract_strided_slice %226 {offsets = [0, 64], sizes = [2, 32], strides = [1, 1]} : vector<2x96xf32> to vector<2x32xf32>
    %241 = vector.extract_strided_slice %229 {offsets = [0, 64], sizes = [2, 32], strides = [1, 1]} : vector<2x96xf32> to vector<2x32xf32>
    %242 = arith.mulf %238, %241 : vector<2x32xf32>
    %243 = arith.addf %240, %242 : vector<2x32xf32>
    %244 = math.tanh %243 : vector<2x32xf32>
    %cst_54 = arith.constant 1.000000e+00 : f32
    %245 = vector.broadcast %cst_54 : f32 to vector<2x32xf32>
    %246 = arith.subf %245, %239 : vector<2x32xf32>
    %247 = arith.mulf %246, %244 : vector<2x32xf32>
    %248 = arith.mulf %239, %198 : vector<2x32xf32>
    %249 = arith.addf %247, %248 : vector<2x32xf32>
    %cst_55 = arith.constant dense<0.000000e+00> : vector<2x128xf32>
    %250 = tpu.matmul %249, %13, %cst_55 {dimension_numbers = #tpu.dot_dimension_numbers<[1], [0], [0], [1], [0, 0, 1, 1], [], []>} : vector<2x32xf32>, vector<32x128xf32>, vector<2x128xf32> -> vector<2x128xf32>
    %cst_56 = arith.constant dense<0.000000e+00> : vector<2x128xf32>
    %251 = tpu.matmul %225, %14, %cst_56 {dimension_numbers = #tpu.dot_dimension_numbers<[1], [0], [0], [1], [0, 0, 1, 1], [], []>} : vector<2x32xf32>, vector<32x128xf32>, vector<2x128xf32> -> vector<2x128xf32>
    %252 = arith.addf %250, %251 : vector<2x128xf32>
    %253 = vector.extract_strided_slice %252 {offsets = [0, 0], sizes = [2, 64], strides = [1, 1]} : vector<2x128xf32> to vector<2x64xf32>
    %254 = vector.broadcast %15 : vector<1x64xf32> to vector<2x64xf32>
    %255 = arith.addf %253, %254 : vector<2x64xf32>
    %256 = arith.negf %255 : vector<2x64xf32>
    %257 = math.exp %256 : vector<2x64xf32>
    %cst_57 = arith.constant 1.000000e+00 : f32
    %258 = vector.broadcast %cst_57 : f32 to vector<2x64xf32>
    %259 = arith.addf %258, %257 : vector<2x64xf32>
    %260 = arith.divf %258, %259 : vector<2x64xf32>
    %261 = vector.extract_strided_slice %260 {offsets = [0, 0], sizes = [2, 32], strides = [1, 1]} : vector<2x64xf32> to vector<2x32xf32>
    %262 = vector.extract_strided_slice %260 {offsets = [0, 32], sizes = [2, 32], strides = [1, 1]} : vector<2x64xf32> to vector<2x32xf32>
    %263 = vector.extract_strided_slice %252 {offsets = [0, 64], sizes = [2, 32], strides = [1, 1]} : vector<2x128xf32> to vector<2x32xf32>
    %264 = vector.broadcast %16 : vector<1x32xf32> to vector<2x32xf32>
    %265 = arith.addf %263, %264 : vector<2x32xf32>
    %266 = vector.extract_strided_slice %252 {offsets = [0, 96], sizes = [2, 32], strides = [1, 1]} : vector<2x128xf32> to vector<2x32xf32>
    %267 = vector.broadcast %17 : vector<1x32xf32> to vector<2x32xf32>
    %268 = arith.addf %266, %267 : vector<2x32xf32>
    %269 = arith.mulf %261, %268 : vector<2x32xf32>
    %270 = arith.addf %265, %269 : vector<2x32xf32>
    %271 = math.tanh %270 : vector<2x32xf32>
    %cst_58 = arith.constant 1.000000e+00 : f32
    %272 = vector.broadcast %cst_58 : f32 to vector<2x32xf32>
    %273 = arith.subf %272, %262 : vector<2x32xf32>
    %274 = arith.mulf %273, %271 : vector<2x32xf32>
    %275 = arith.mulf %262, %225 : vector<2x32xf32>
    %276 = arith.addf %274, %275 : vector<2x32xf32>
    %277 = vector.extract_strided_slice %10 {offsets = [10, 0], sizes = [2, 96], strides = [1, 1]} : vector<16x96xf32> to vector<2x96xf32>
    %cst_59 = arith.constant dense<0.000000e+00> : vector<2x96xf32>
    %278 = tpu.matmul %249, %11, %cst_59 {dimension_numbers = #tpu.dot_dimension_numbers<[1], [0], [0], [1], [0, 0, 1, 1], [], []>} : vector<2x32xf32>, vector<32x96xf32>, vector<2x96xf32> -> vector<2x96xf32>
    %279 = vector.broadcast %12 : vector<1x96xf32> to vector<2x96xf32>
    %280 = arith.addf %278, %279 : vector<2x96xf32>
    %281 = vector.extract_strided_slice %277 {offsets = [0, 0], sizes = [2, 64], strides = [1, 1]} : vector<2x96xf32> to vector<2x64xf32>
    %282 = vector.extract_strided_slice %280 {offsets = [0, 0], sizes = [2, 64], strides = [1, 1]} : vector<2x96xf32> to vector<2x64xf32>
    %283 = arith.addf %281, %282 : vector<2x64xf32>
    %284 = arith.negf %283 : vector<2x64xf32>
    %285 = math.exp %284 : vector<2x64xf32>
    %cst_60 = arith.constant 1.000000e+00 : f32
    %286 = vector.broadcast %cst_60 : f32 to vector<2x64xf32>
    %287 = arith.addf %286, %285 : vector<2x64xf32>
    %288 = arith.divf %286, %287 : vector<2x64xf32>
    %289 = vector.extract_strided_slice %288 {offsets = [0, 0], sizes = [2, 32], strides = [1, 1]} : vector<2x64xf32> to vector<2x32xf32>
    %290 = vector.extract_strided_slice %288 {offsets = [0, 32], sizes = [2, 32], strides = [1, 1]} : vector<2x64xf32> to vector<2x32xf32>
    %291 = vector.extract_strided_slice %277 {offsets = [0, 64], sizes = [2, 32], strides = [1, 1]} : vector<2x96xf32> to vector<2x32xf32>
    %292 = vector.extract_strided_slice %280 {offsets = [0, 64], sizes = [2, 32], strides = [1, 1]} : vector<2x96xf32> to vector<2x32xf32>
    %293 = arith.mulf %289, %292 : vector<2x32xf32>
    %294 = arith.addf %291, %293 : vector<2x32xf32>
    %295 = math.tanh %294 : vector<2x32xf32>
    %cst_61 = arith.constant 1.000000e+00 : f32
    %296 = vector.broadcast %cst_61 : f32 to vector<2x32xf32>
    %297 = arith.subf %296, %290 : vector<2x32xf32>
    %298 = arith.mulf %297, %295 : vector<2x32xf32>
    %299 = arith.mulf %290, %249 : vector<2x32xf32>
    %300 = arith.addf %298, %299 : vector<2x32xf32>
    %cst_62 = arith.constant dense<0.000000e+00> : vector<2x128xf32>
    %301 = tpu.matmul %300, %13, %cst_62 {dimension_numbers = #tpu.dot_dimension_numbers<[1], [0], [0], [1], [0, 0, 1, 1], [], []>} : vector<2x32xf32>, vector<32x128xf32>, vector<2x128xf32> -> vector<2x128xf32>
    %cst_63 = arith.constant dense<0.000000e+00> : vector<2x128xf32>
    %302 = tpu.matmul %276, %14, %cst_63 {dimension_numbers = #tpu.dot_dimension_numbers<[1], [0], [0], [1], [0, 0, 1, 1], [], []>} : vector<2x32xf32>, vector<32x128xf32>, vector<2x128xf32> -> vector<2x128xf32>
    %303 = arith.addf %301, %302 : vector<2x128xf32>
    %304 = vector.extract_strided_slice %303 {offsets = [0, 0], sizes = [2, 64], strides = [1, 1]} : vector<2x128xf32> to vector<2x64xf32>
    %305 = vector.broadcast %15 : vector<1x64xf32> to vector<2x64xf32>
    %306 = arith.addf %304, %305 : vector<2x64xf32>
    %307 = arith.negf %306 : vector<2x64xf32>
    %308 = math.exp %307 : vector<2x64xf32>
    %cst_64 = arith.constant 1.000000e+00 : f32
    %309 = vector.broadcast %cst_64 : f32 to vector<2x64xf32>
    %310 = arith.addf %309, %308 : vector<2x64xf32>
    %311 = arith.divf %309, %310 : vector<2x64xf32>
    %312 = vector.extract_strided_slice %311 {offsets = [0, 0], sizes = [2, 32], strides = [1, 1]} : vector<2x64xf32> to vector<2x32xf32>
    %313 = vector.extract_strided_slice %311 {offsets = [0, 32], sizes = [2, 32], strides = [1, 1]} : vector<2x64xf32> to vector<2x32xf32>
    %314 = vector.extract_strided_slice %303 {offsets = [0, 64], sizes = [2, 32], strides = [1, 1]} : vector<2x128xf32> to vector<2x32xf32>
    %315 = vector.broadcast %16 : vector<1x32xf32> to vector<2x32xf32>
    %316 = arith.addf %314, %315 : vector<2x32xf32>
    %317 = vector.extract_strided_slice %303 {offsets = [0, 96], sizes = [2, 32], strides = [1, 1]} : vector<2x128xf32> to vector<2x32xf32>
    %318 = vector.broadcast %17 : vector<1x32xf32> to vector<2x32xf32>
    %319 = arith.addf %317, %318 : vector<2x32xf32>
    %320 = arith.mulf %312, %319 : vector<2x32xf32>
    %321 = arith.addf %316, %320 : vector<2x32xf32>
    %322 = math.tanh %321 : vector<2x32xf32>
    %cst_65 = arith.constant 1.000000e+00 : f32
    %323 = vector.broadcast %cst_65 : f32 to vector<2x32xf32>
    %324 = arith.subf %323, %313 : vector<2x32xf32>
    %325 = arith.mulf %324, %322 : vector<2x32xf32>
    %326 = arith.mulf %313, %276 : vector<2x32xf32>
    %327 = arith.addf %325, %326 : vector<2x32xf32>
    %328 = vector.extract_strided_slice %10 {offsets = [12, 0], sizes = [2, 96], strides = [1, 1]} : vector<16x96xf32> to vector<2x96xf32>
    %cst_66 = arith.constant dense<0.000000e+00> : vector<2x96xf32>
    %329 = tpu.matmul %300, %11, %cst_66 {dimension_numbers = #tpu.dot_dimension_numbers<[1], [0], [0], [1], [0, 0, 1, 1], [], []>} : vector<2x32xf32>, vector<32x96xf32>, vector<2x96xf32> -> vector<2x96xf32>
    %330 = vector.broadcast %12 : vector<1x96xf32> to vector<2x96xf32>
    %331 = arith.addf %329, %330 : vector<2x96xf32>
    %332 = vector.extract_strided_slice %328 {offsets = [0, 0], sizes = [2, 64], strides = [1, 1]} : vector<2x96xf32> to vector<2x64xf32>
    %333 = vector.extract_strided_slice %331 {offsets = [0, 0], sizes = [2, 64], strides = [1, 1]} : vector<2x96xf32> to vector<2x64xf32>
    %334 = arith.addf %332, %333 : vector<2x64xf32>
    %335 = arith.negf %334 : vector<2x64xf32>
    %336 = math.exp %335 : vector<2x64xf32>
    %cst_67 = arith.constant 1.000000e+00 : f32
    %337 = vector.broadcast %cst_67 : f32 to vector<2x64xf32>
    %338 = arith.addf %337, %336 : vector<2x64xf32>
    %339 = arith.divf %337, %338 : vector<2x64xf32>
    %340 = vector.extract_strided_slice %339 {offsets = [0, 0], sizes = [2, 32], strides = [1, 1]} : vector<2x64xf32> to vector<2x32xf32>
    %341 = vector.extract_strided_slice %339 {offsets = [0, 32], sizes = [2, 32], strides = [1, 1]} : vector<2x64xf32> to vector<2x32xf32>
    %342 = vector.extract_strided_slice %328 {offsets = [0, 64], sizes = [2, 32], strides = [1, 1]} : vector<2x96xf32> to vector<2x32xf32>
    %343 = vector.extract_strided_slice %331 {offsets = [0, 64], sizes = [2, 32], strides = [1, 1]} : vector<2x96xf32> to vector<2x32xf32>
    %344 = arith.mulf %340, %343 : vector<2x32xf32>
    %345 = arith.addf %342, %344 : vector<2x32xf32>
    %346 = math.tanh %345 : vector<2x32xf32>
    %cst_68 = arith.constant 1.000000e+00 : f32
    %347 = vector.broadcast %cst_68 : f32 to vector<2x32xf32>
    %348 = arith.subf %347, %341 : vector<2x32xf32>
    %349 = arith.mulf %348, %346 : vector<2x32xf32>
    %350 = arith.mulf %341, %300 : vector<2x32xf32>
    %351 = arith.addf %349, %350 : vector<2x32xf32>
    %cst_69 = arith.constant dense<0.000000e+00> : vector<2x128xf32>
    %352 = tpu.matmul %351, %13, %cst_69 {dimension_numbers = #tpu.dot_dimension_numbers<[1], [0], [0], [1], [0, 0, 1, 1], [], []>} : vector<2x32xf32>, vector<32x128xf32>, vector<2x128xf32> -> vector<2x128xf32>
    %cst_70 = arith.constant dense<0.000000e+00> : vector<2x128xf32>
    %353 = tpu.matmul %327, %14, %cst_70 {dimension_numbers = #tpu.dot_dimension_numbers<[1], [0], [0], [1], [0, 0, 1, 1], [], []>} : vector<2x32xf32>, vector<32x128xf32>, vector<2x128xf32> -> vector<2x128xf32>
    %354 = arith.addf %352, %353 : vector<2x128xf32>
    %355 = vector.extract_strided_slice %354 {offsets = [0, 0], sizes = [2, 64], strides = [1, 1]} : vector<2x128xf32> to vector<2x64xf32>
    %356 = vector.broadcast %15 : vector<1x64xf32> to vector<2x64xf32>
    %357 = arith.addf %355, %356 : vector<2x64xf32>
    %358 = arith.negf %357 : vector<2x64xf32>
    %359 = math.exp %358 : vector<2x64xf32>
    %cst_71 = arith.constant 1.000000e+00 : f32
    %360 = vector.broadcast %cst_71 : f32 to vector<2x64xf32>
    %361 = arith.addf %360, %359 : vector<2x64xf32>
    %362 = arith.divf %360, %361 : vector<2x64xf32>
    %363 = vector.extract_strided_slice %362 {offsets = [0, 0], sizes = [2, 32], strides = [1, 1]} : vector<2x64xf32> to vector<2x32xf32>
    %364 = vector.extract_strided_slice %362 {offsets = [0, 32], sizes = [2, 32], strides = [1, 1]} : vector<2x64xf32> to vector<2x32xf32>
    %365 = vector.extract_strided_slice %354 {offsets = [0, 64], sizes = [2, 32], strides = [1, 1]} : vector<2x128xf32> to vector<2x32xf32>
    %366 = vector.broadcast %16 : vector<1x32xf32> to vector<2x32xf32>
    %367 = arith.addf %365, %366 : vector<2x32xf32>
    %368 = vector.extract_strided_slice %354 {offsets = [0, 96], sizes = [2, 32], strides = [1, 1]} : vector<2x128xf32> to vector<2x32xf32>
    %369 = vector.broadcast %17 : vector<1x32xf32> to vector<2x32xf32>
    %370 = arith.addf %368, %369 : vector<2x32xf32>
    %371 = arith.mulf %363, %370 : vector<2x32xf32>
    %372 = arith.addf %367, %371 : vector<2x32xf32>
    %373 = math.tanh %372 : vector<2x32xf32>
    %cst_72 = arith.constant 1.000000e+00 : f32
    %374 = vector.broadcast %cst_72 : f32 to vector<2x32xf32>
    %375 = arith.subf %374, %364 : vector<2x32xf32>
    %376 = arith.mulf %375, %373 : vector<2x32xf32>
    %377 = arith.mulf %364, %327 : vector<2x32xf32>
    %378 = arith.addf %376, %377 : vector<2x32xf32>
    %379 = vector.extract_strided_slice %10 {offsets = [14, 0], sizes = [2, 96], strides = [1, 1]} : vector<16x96xf32> to vector<2x96xf32>
    %cst_73 = arith.constant dense<0.000000e+00> : vector<2x96xf32>
    %380 = tpu.matmul %351, %11, %cst_73 {dimension_numbers = #tpu.dot_dimension_numbers<[1], [0], [0], [1], [0, 0, 1, 1], [], []>} : vector<2x32xf32>, vector<32x96xf32>, vector<2x96xf32> -> vector<2x96xf32>
    %381 = vector.broadcast %12 : vector<1x96xf32> to vector<2x96xf32>
    %382 = arith.addf %380, %381 : vector<2x96xf32>
    %383 = vector.extract_strided_slice %379 {offsets = [0, 0], sizes = [2, 64], strides = [1, 1]} : vector<2x96xf32> to vector<2x64xf32>
    %384 = vector.extract_strided_slice %382 {offsets = [0, 0], sizes = [2, 64], strides = [1, 1]} : vector<2x96xf32> to vector<2x64xf32>
    %385 = arith.addf %383, %384 : vector<2x64xf32>
    %386 = arith.negf %385 : vector<2x64xf32>
    %387 = math.exp %386 : vector<2x64xf32>
    %cst_74 = arith.constant 1.000000e+00 : f32
    %388 = vector.broadcast %cst_74 : f32 to vector<2x64xf32>
    %389 = arith.addf %388, %387 : vector<2x64xf32>
    %390 = arith.divf %388, %389 : vector<2x64xf32>
    %391 = vector.extract_strided_slice %390 {offsets = [0, 0], sizes = [2, 32], strides = [1, 1]} : vector<2x64xf32> to vector<2x32xf32>
    %392 = vector.extract_strided_slice %390 {offsets = [0, 32], sizes = [2, 32], strides = [1, 1]} : vector<2x64xf32> to vector<2x32xf32>
    %393 = vector.extract_strided_slice %379 {offsets = [0, 64], sizes = [2, 32], strides = [1, 1]} : vector<2x96xf32> to vector<2x32xf32>
    %394 = vector.extract_strided_slice %382 {offsets = [0, 64], sizes = [2, 32], strides = [1, 1]} : vector<2x96xf32> to vector<2x32xf32>
    %395 = arith.mulf %391, %394 : vector<2x32xf32>
    %396 = arith.addf %393, %395 : vector<2x32xf32>
    %397 = math.tanh %396 : vector<2x32xf32>
    %cst_75 = arith.constant 1.000000e+00 : f32
    %398 = vector.broadcast %cst_75 : f32 to vector<2x32xf32>
    %399 = arith.subf %398, %392 : vector<2x32xf32>
    %400 = arith.mulf %399, %397 : vector<2x32xf32>
    %401 = arith.mulf %392, %351 : vector<2x32xf32>
    %402 = arith.addf %400, %401 : vector<2x32xf32>
    %cst_76 = arith.constant dense<0.000000e+00> : vector<2x128xf32>
    %403 = tpu.matmul %402, %13, %cst_76 {dimension_numbers = #tpu.dot_dimension_numbers<[1], [0], [0], [1], [0, 0, 1, 1], [], []>} : vector<2x32xf32>, vector<32x128xf32>, vector<2x128xf32> -> vector<2x128xf32>
    %cst_77 = arith.constant dense<0.000000e+00> : vector<2x128xf32>
    %404 = tpu.matmul %378, %14, %cst_77 {dimension_numbers = #tpu.dot_dimension_numbers<[1], [0], [0], [1], [0, 0, 1, 1], [], []>} : vector<2x32xf32>, vector<32x128xf32>, vector<2x128xf32> -> vector<2x128xf32>
    %405 = arith.addf %403, %404 : vector<2x128xf32>
    %406 = vector.extract_strided_slice %405 {offsets = [0, 0], sizes = [2, 64], strides = [1, 1]} : vector<2x128xf32> to vector<2x64xf32>
    %407 = vector.broadcast %15 : vector<1x64xf32> to vector<2x64xf32>
    %408 = arith.addf %406, %407 : vector<2x64xf32>
    %409 = arith.negf %408 : vector<2x64xf32>
    %410 = math.exp %409 : vector<2x64xf32>
    %cst_78 = arith.constant 1.000000e+00 : f32
    %411 = vector.broadcast %cst_78 : f32 to vector<2x64xf32>
    %412 = arith.addf %411, %410 : vector<2x64xf32>
    %413 = arith.divf %411, %412 : vector<2x64xf32>
    %414 = vector.extract_strided_slice %413 {offsets = [0, 0], sizes = [2, 32], strides = [1, 1]} : vector<2x64xf32> to vector<2x32xf32>
    %415 = vector.extract_strided_slice %413 {offsets = [0, 32], sizes = [2, 32], strides = [1, 1]} : vector<2x64xf32> to vector<2x32xf32>
    %416 = vector.extract_strided_slice %405 {offsets = [0, 64], sizes = [2, 32], strides = [1, 1]} : vector<2x128xf32> to vector<2x32xf32>
    %417 = vector.broadcast %16 : vector<1x32xf32> to vector<2x32xf32>
    %418 = arith.addf %416, %417 : vector<2x32xf32>
    %419 = vector.extract_strided_slice %405 {offsets = [0, 96], sizes = [2, 32], strides = [1, 1]} : vector<2x128xf32> to vector<2x32xf32>
    %420 = vector.broadcast %17 : vector<1x32xf32> to vector<2x32xf32>
    %421 = arith.addf %419, %420 : vector<2x32xf32>
    %422 = arith.mulf %414, %421 : vector<2x32xf32>
    %423 = arith.addf %418, %422 : vector<2x32xf32>
    %424 = math.tanh %423 : vector<2x32xf32>
    %cst_79 = arith.constant 1.000000e+00 : f32
    %425 = vector.broadcast %cst_79 : f32 to vector<2x32xf32>
    %426 = arith.subf %425, %415 : vector<2x32xf32>
    %427 = arith.mulf %426, %424 : vector<2x32xf32>
    %428 = arith.mulf %415, %378 : vector<2x32xf32>
    %429 = arith.addf %427, %428 : vector<2x32xf32>
    %430 = tpu.concatenate %72, %123, %174, %225, %276, %327, %378, %429 in 0 : vector<2x32xf32>, vector<2x32xf32>, vector<2x32xf32>, vector<2x32xf32>, vector<2x32xf32>, vector<2x32xf32>, vector<2x32xf32>, vector<2x32xf32> -> vector<16x32xf32>
    %c0_80 = arith.constant 0 : index
    %c0_81 = arith.constant 0 : index
    %431 = vector.load %arg11[%c0_80, %c0_81] : memref<32x32xf32, #tpu.memory_space<vmem>>, vector<32x32xf32>
    %cst_82 = arith.constant dense<0.000000e+00> : vector<16x32xf32>
    %432 = tpu.matmul %430, %431, %cst_82 {dimension_numbers = #tpu.dot_dimension_numbers<[1], [0], [0], [1], [0, 0, 1, 1], [], []>} : vector<16x32xf32>, vector<32x32xf32>, vector<16x32xf32> -> vector<16x32xf32>
    %c0_83 = arith.constant 0 : index
    %c0_84 = arith.constant 0 : index
    %433 = vector.load %arg12[%c0_83, %c0_84] : memref<1x32xf32, #tpu.memory_space<vmem>>, vector<1x32xf32>
    %434 = vector.broadcast %433 : vector<1x32xf32> to vector<16x32xf32>
    %435 = arith.addf %432, %434 : vector<16x32xf32>
    %c0_85 = arith.constant 0 : index
    %c0_86 = arith.constant 0 : index
    %436 = vector.load %arg13[%c0_85, %c0_86] : memref<16x32xf32, #tpu.memory_space<vmem>>, vector<16x32xf32>
    tpu.vector_store %arg13[%c0_85, %c0_86], %435 {strides = array<i32>} : memref<16x32xf32, #tpu.memory_space<vmem>>, vector<16x32xf32>,
    %c0_87 = arith.constant 0 : index
    %c0_88 = arith.constant 0 : index
    %c0_89 = arith.constant 0 : index
    %437 = vector.load %arg14[%c0_87, %c0_88, %c0_89] : memref<2x2x32xf32, #tpu.memory_space<vmem>>, vector<1x2x32xf32>
    %438 = vector.shape_cast %437 : vector<1x2x32xf32> to vector<2x32xf32>
    %439 = vector.shape_cast %402 : vector<2x32xf32> to vector<1x2x32xf32>
    tpu.vector_store %arg14[%c0_87, %c0_88, %c0_89], %439 {strides = array<i32>} : memref<2x2x32xf32, #tpu.memory_space<vmem>>, vector<1x2x32xf32>,
    %c1_90 = arith.constant 1 : index
    %c0_91 = arith.constant 0 : index
    %c0_92 = arith.constant 0 : index
    %440 = vector.load %arg14[%c1_90, %c0_91, %c0_92] : memref<2x2x32xf32, #tpu.memory_space<vmem>>, vector<1x2x32xf32>
    %441 = vector.shape_cast %440 : vector<1x2x32xf32> to vector<2x32xf32>
    %442 = vector.shape_cast %429 : vector<2x32xf32> to vector<1x2x32xf32>
    tpu.vector_store %arg14[%c1_90, %c0_91, %c0_92], %442 {strides = array<i32>} : memref<2x2x32xf32, #tpu.memory_space<vmem>>, vector<1x2x32xf32>,
    return
  }
}

</mosaic_0001>

<bundles_post_ra>
// kernel: decoder_forward.1
= control target key start
LH: loop header
LB: loop body
LE: loop exit
PB: predicated region body
PF: predicated region fallthrough
CT: control target
= control target key end

     0   :  { %20 = vsyncpa [#allocation3], 0  ;;  %s4021_s0 = inlined_call_operand.vmem [shape: s32[16,1], index: 0, kind: input, shape index: {}]   ;;  %s4022_s1 = inlined_call_operand.vmem [shape: f32[32,96], index: 1, kind: input, shape index: {}]   ;;  %s4023_s2 = inlined_call_operand.vmem [shape: f32[2,2,32], index: 2, kind: input, shape index: {}]   ;;  %s4024_s3 = inlined_call_operand.vmem [shape: f32[1,96], index: 3, kind: input, shape index: {}]   ;;  %s4025_s4 = inlined_call_operand.hbm [shape: f32[32,96], index: 4, kind: input, shape index: {}]   ;;  %s4026_s5 = inlined_call_operand.vmem [shape: f32[1,96], index: 5, kind: input, shape index: {}]   ;;  %s4027_s6 = inlined_call_operand.hbm [shape: f32[32,128], index: 6, kind: input, shape index: {}]   ;;  %s4028_s7 = inlined_call_operand.hbm [shape: f32[32,128], index: 7, kind: input, shape index: {}]   ;;  %s4029_s8 = inlined_call_operand.vmem [shape: f32[1,64], index: 8, kind: input, shape index: {}]   ;;  %s4030_s9 = inlined_call_operand.vmem [shape: f32[1,32], index: 9, kind: input, shape index: {}]   ;;  %s4031_s10 = inlined_call_operand.vmem [shape: f32[1,32], index: 10, kind: input, shape index: {}]   ;;  %s4032_s11 = inlined_call_operand.hbm [shape: f32[32,32], index: 11, kind: input, shape index: {}]   ;;  %s4033_s12 = inlined_call_operand.vmem [shape: f32[1,32], index: 12, kind: input, shape index: {}]   ;;  %s4034_s13 = inlined_call_operand.vmem [shape: f32[16,32], index: 13, kind: output, shape index: {0}]   ;;  %s4035_s14 = inlined_call_operand.hbm [shape: f32[2,2,32], index: 14, kind: output, shape index: {1}]  }
   0x1   :  { %21 = vsyncpa [#allocation6], 0 }
   0x2   :  { %22 = vsyncpa [#allocation9], 0 }
   0x3   :  { %23 = vsyncpa [#allocation4], 0  ;;  %s3346_s29 = smov [#allocation5]   ;;  %s3347_s15 = smov [#allocation2]  }
   0x4   :  { %s51_s30 = sshll.u32 %s3346_s29, 4  ;;  %s37_s16 = sshll.u32 %s3347_s15, 4  ;;  %s52_s30 = int_to_ptr.vmem [resolvable:$true] %s51_s30  ;;  %s38_s16 = int_to_ptr.vmem [resolvable:$true] %s37_s16 }
   0x5   :  { %s3246_s17 = scalar_lea.vmem %s52_s30, 512  ;;  %p3251_p1 = scmp.lt.s32.totalorder %s52_s30, %s52_s30 }
   0x6   :  { %p3247_p0 = scmp.ne.s32.totalorder %s52_s30, %s3246_s17  ;;  %p3252_p2 = scmp.lt.s32.totalorder %s3246_s17, %s3246_s17 }
   0x8   :  { %p3253_p3 = por %p3252_p2, %p3251_p1 }
   0xa   :  { %p3254_p4 = pnand %p3253_p3, %p3247_p0 }
   0xc   :  { %3257 = shalt.err (!%p3254_p4)
}
   0xd   :  { %s3348_s18 = smov 128   ;;  %s3349_s19 = smov 8  }
   0xe   :  { %57 = dma.hbm_to_vmem [thread:$0]  %s4027_s6, 512, %s52_s30, [#allocation6], %s3348_s18, %s3348_s18, %s3349_s19  }
   0xf   :  { %s3266_s22 = scalar_lea.vmem %s38_s16, 512  ;;  %p3271_p6 = scmp.lt.s32.totalorder %s38_s16, %s38_s16 }
  0x10   :  { %p3267_p5 = scmp.ne.s32.totalorder %s38_s16, %s3266_s22  ;;  %p3272_p7 = scmp.lt.s32.totalorder %s3266_s22, %s3266_s22 }
  0x12   :  { %p3273_p8 = por %p3272_p7, %p3271_p6 }
  0x14   :  { %p3274_p9 = pnand %p3273_p8, %p3267_p5 }
  0x16   :  { %3277 = shalt.err (!%p3274_p9)
}
  0x17   :  { %43 = dma.hbm_to_vmem [thread:$0]  %s4025_s4, 512, %s38_s16, [#allocation3], %s3348_s18, %s3348_s18, %s3349_s19  }
  0x18   :  { %s3350_s25 = smov [#allocation7]   ;;  %s3351_s27 = smov [#allocation8]  }
  0x19   :  { %s63_s26 = sshll.u32 %s3350_s25, 4  ;;  %s81_s28 = sshll.u32 %s3351_s27, 4  ;;  %s64_s26 = int_to_ptr.vmem [resolvable:$true] %s63_s26  ;;  %s82_s28 = int_to_ptr.vmem [resolvable:$true] %s81_s28 }
  0x1a   :  { %s3286_s6 = scalar_lea.vmem %s64_s26, 512  ;;  %p3291_p11 = scmp.lt.s32.totalorder %s64_s26, %s64_s26 }
  0x1b   :  { %p3287_p10 = scmp.ne.s32.totalorder %s64_s26, %s3286_s6  ;;  %p3292_p12 = scmp.lt.s32.totalorder %s3286_s6, %s3286_s6 }
  0x1d   :  { %p3293_p13 = por %p3292_p12, %p3291_p11 }
  0x1f   :  { %p3294_p0 = pnand %p3293_p13, %p3287_p10 }
  0x21   :  { %3297 = shalt.err (!%p3294_p0)
}
  0x22   :  { %69 = dma.hbm_to_vmem [thread:$0]  %s4028_s7, 512, %s64_s26, [#allocation6], %s3348_s18, %s3348_s18, %s3349_s19  }
  0x23   :  { %s3306_s4 = scalar_lea.vmem %s82_s28, 512  ;;  %p3311_p2 = scmp.lt.s32.totalorder %s82_s28, %s82_s28 }
  0x24   :  { %p3307_p1 = scmp.ne.s32.totalorder %s82_s28, %s3306_s4  ;;  %p3312_p3 = scmp.lt.s32.totalorder %s3306_s4, %s3306_s4 }
  0x26   :  { %p3313_p4 = por %p3312_p3, %p3311_p2 }
  0x28   :  { %p3314_p5 = pnand %p3313_p4, %p3307_p1 }
  0x2a   :  { %3317 = shalt.err (!%p3314_p5)
}
  0x2b   :  { %87 = dma.hbm_to_vmem [thread:$0]  %s4032_s11, 512, %s82_s28, [#allocation9], %s3348_s18, %s3348_s18, %s3349_s19  }
  0x2c   :  { %3338 = dma.done.wait [#allocation3], 512  }
  0x2d   :  { %3339 = vsyncadd [#allocation3], 4294966784 }
  0x2e   :  { %3340 = dma.done.wait [#allocation6], 1024  }
  0x2f   :  { %3341 = vsyncadd [#allocation6], 4294966272 }
  0x30   :  { %3342 = dma.done.wait [#allocation9], 512  }
  0x31   :  { %3343 = vsyncadd [#allocation9], 4294966784  ;;  %v3352_v0 = vmov 0   ;;  %v3353_v1 = vmov 0.0   ;;  %vm3354_vm0 = vmmov 0   ;;  %v102_v2 = vld [vmem:[%s4021_s0] sm:$0xff]  ;;  %v104_v13 = vlaneseq }
  0x32   :  { %3127 = vset.pattern.permute.xlu0 %v3352_v0  ;;  %2838 = vmatprep.subr.mxu1 %v3353_v1  ;;  %v3465_v3 = vld [vmem:[#allocation2 + $0x18] sm:$0xff]  ;;  %v3468_v4 = vld [vmem:[#allocation2 + $0x10] sm:$0xff]  ;;  %v103_v5 = vld [vmem:[%s4021_s0 + $0x8] sm:$0xff]  ;;  %vm129_vm1 = vcmask 261120   ;;  %s3355_s6 = smov 64   ;;  %s3356_s4 = smov 32  }
  0x33   :  { %2846 = vmatprep.mubr.msk.f32.mxu1 %vm3354_vm0, %v3353_v1  ;;  %107 = vperm.xlu0 %3127, %v102_v2   ;;  %v3474_v6 = vld [vmem:[#allocation2 + $0x8] sm:$0xff]  ;;  %v121_v7 = vld [vmem:[%s4022_s1 + $0x18] sm:$0xff]  ;;  %v120_v8 = vld [vmem:[%s4022_s1 + $0x10] sm:$0xff]  ;;  %v105_v14 = vand.u32 127, %v104_v13  ;;  %vm2501_vm4 = vcmask 1041408   ;;  %vm2503_vm5 = vcmask 1043456  }
  0x34   :  { %2839 = vmatpush3.msra.mxu1 %v3465_v3  ;;  %2827 = vmatprep.subr.mxu0 %v121_v7  ;;  %v3484_v9 = vld [vmem:[#allocation2] sm:$0xff]  ;;  %v119_v11 = vld [vmem:[%s4022_s1 + $0x8] sm:$0xff]  ;;  %v3527_v37 = vld [vmem:[#allocation7 + $0x18] sm:$0xff]  ;;  %vm2505_vm6 = vcmask 1045504   ;;  %vm2611_vm7 = vcmask 261126   ;;  %vm2617_vm8 = vcmask 254976  }
  0x35   :  { %2840 = vmatprep.subr.mxu1 %v3353_v1  ;;  %2828 = vmatpush3.msra.mxu0 %v121_v7  ;;  %v227_v10 = vld [vmem:[%s4023_s2] sm:$0x3]  ;;  %v3529_v38 = vld [vmem:[#allocation7 + $0x10] sm:$0xff]  ;;  %v3532_v39 = vld [vmem:[#allocation5 + $0x18] sm:$0xff] }
  0x36   :  { %2841 = vmatpush3.msra.mxu1 %v3468_v4  ;;  %2829 = vmatprep.subr.mxu0 %v120_v8  ;;  %v118_v12 = vld [vmem:[%s4022_s1] sm:$0xff]  ;;  %v3535_v40 = vld [vmem:[#allocation7 + $0x8] sm:$0xff]  ;;  %v3538_v41 = vld [vmem:[#allocation5 + $0x10] sm:$0xff] }
  0x37   :  { %2842 = vmatprep.subr.mxu1 %v3353_v1  ;;  %110 = vperm.xlu0 %3127, %v103_v5   ;;  %v3512_v19 = vld [vmem:[%s4026_s5] ss:$0 sm:$0xff]  ;;  %v3542_v42 = vld [vmem:[#allocation5 + $0x8] sm:$0xff]  ;;  %v3552_v44 = vld [vmem:[%s4023_s2 + $0x2] sm:$0x3]  ;;  %s3357_s2 = smov 96  }
  0x38   :  { %2843 = vmatpush3.msra.mxu1 %v3474_v6  ;;  %2830 = vmatpush3.msra.mxu0 %v120_v8  ;;  %v2644_v23 = vld [vmem:[%s4024_s3] ss:$0 sm:$0xff] }
  0x39   :  { %2844 = vmatprep.subr.mxu1 %v3353_v1  ;;  %2831 = vmatprep.subr.mxu0 %v119_v11  ;;  %v3545_v43 = vld [vmem:[#allocation7] sm:$0xff] }
  0x3a   :  { %2845 = vmatpush3.msra.mxu1 %v3484_v9  ;;  %2832 = vmatpush3.msra.mxu0 %v119_v11  ;;  %v3559_v45 = vld [vmem:[#allocation5] sm:$0xff] }
  0x3b   :  { %2847 = vmatmul.mubr.msk.f32.vlgmr.msra.gmra.mxu1 %vm129_vm1, %v227_v10  ;;  %2860 = vmatprep.subr.mxu1 %v3353_v1  ;;  %v2656_v47 = vld [vmem:[%s4031_s10] ss:$0 sm:$0xff] }
  0x3c   :  { %2833 = vmatprep.subr.mxu0 %v118_v12  ;;  %2868 = vmatprep.mubr.msk.f32.mxu1 %vm3354_vm0, %v3353_v1  ;;  %v2655_v5 = vld [vmem:[%s4030_s9] ss:$0 sm:$0xff] }
  0x3d   :  { %2834 = vmatpush3.msra.mxu0 %v118_v12  ;;  %2861 = vmatpush3.msra.mxu1 %v3532_v39  ;;  %v3620_v7 = vld [vmem:[%s4029_s8] ss:$0 sm:$0xff] }
  0x3e   :  { %2849 = vmatprep.subr.mxu0 %v3353_v1  ;;  %2862 = vmatprep.subr.mxu1 %v3353_v1 }
  0x3f   :  { %2863 = vmatpush3.msra.mxu1 %v3538_v41 }
  0x40   :  { %2864 = vmatprep.subr.mxu1 %v3353_v1 }
  0x41   :  { %2865 = vmatpush3.msra.mxu1 %v3542_v42 }
  0x42   :  { %2866 = vmatprep.subr.mxu1 %v3353_v1 }
  0x43   :  { %2867 = vmatpush3.msra.mxu1 %v3559_v45 }
  0x44   :  { %2882 = vmatprep.subr.mxu1 %v3353_v1 }
  0xae   :  { %v108_v15 = vpop.permute.xlu0 %107 }
  0xaf   :  { %vm112_vm2 = vcmp.eq.s32.totalorder %v105_v14, %v108_v15 }
  0xb0   :  { %v2642_v16 = vsel %vm112_vm2, 1.0, %v3353_v1 }
  0xb1   :  { %2835 = vmatprep.mubr.msk.f32.mxu0 %vm129_vm1, %v2642_v16 }
  0xb2   :  { %v111_v17 = vpop.permute.xlu0 %110 }
  0xb3   :  { %vm113_vm3 = vcmp.eq.s32.totalorder %v105_v14, %v111_v17 }
  0xb4   :  { %v2643_v18 = vsel %vm113_vm3, 1.0, %v3353_v1 }
  0xb5   :  { %2836 = vmatmul.mubr.msk.f32.vlgmr.msra.gmra.mxu0 %vm129_vm1, %v2643_v18 }
  0xb6   :  { %2857 = vmatprep.mubr.msk.f32.mxu0 %vm3354_vm0, %v3353_v1  ;;  %2850 = vmatpush3.msra.mxu0 %v3527_v37 }
  0xb7   :  { %2851 = vmatprep.subr.mxu0 %v3353_v1 }
  0xb8   :  { %2852 = vmatpush3.msra.mxu0 %v3529_v38 }
  0xb9   :  { %2853 = vmatprep.subr.mxu0 %v3353_v1 }
  0xba   :  { %2854 = vmatpush3.msra.mxu0 %v3535_v40 }
  0xbb   :  { %2855 = vmatprep.subr.mxu0 %v3353_v1 }
  0xbc   :  { %2856 = vmatpush3.msra.mxu0 %v3545_v43 }
  0xbd   :  { %2871 = vmatprep.subr.mxu0 %v3353_v1  ;;  %2858 = vmatmul.mubr.msk.f32.vlgmr.msra.gmra.mxu0 %vm129_vm1, %v3552_v44 }
  0xbe   :  { %2872 = vmatpush3.msra.mxu0 %v3465_v3  ;;  %2879 = vmatprep.mubr.msk.f32.mxu0 %vm3354_vm0, %v3353_v1 }
  0xbf   :  { %2873 = vmatprep.subr.mxu0 %v3353_v1 }
  0xc0   :  { %2874 = vmatpush3.msra.mxu0 %v3468_v4 }
  0xc1   :  { %2875 = vmatprep.subr.mxu0 %v3353_v1 }
  0xc2   :  { %2876 = vmatpush3.msra.mxu0 %v3474_v6 }
  0xc3   :  { %2877 = vmatprep.subr.mxu0 %v3353_v1 }
  0xc4   :  { %2878 = vmatpush3.msra.mxu0 %v3484_v9 }
  0xc5   :  { %2893 = vmatprep.subr.mxu0 %v3353_v1 }
  0xfb   :  { %v305_v20 = vpop.f32.mrf.mxu1 }
  0xfc   :  { %v306_v21 = vadd.f32 %v3512_v19, %v305_v20 }
  0xfd   :  { %v2848_v22 = vpop.f32.mrf.mxu1 }
  0xfe   :  { %317 = vrot.lane.b32.xlu1 %v306_v21, %s3355_s6 }
 0x170   :  { %v318_v32 = vpop.permute.xlu1 %317 }
 0x175   :  { %v2837_v24 = vpop.f32.mrf.mxu0 }
 0x176   :  { %v3519_v25 = vadd.f32 %v2837_v24, %v2644_v23 }
 0x177   :  { %v202_v26 = vpop.f32.mrf.mxu0 }
 0x178   :  { %v3521_v27 = vadd.f32 %v2644_v23, %v202_v26 }
 0x17a   :  { %v309_v28 = vadd.f32 %v306_v21, %v3521_v27 }
 0x17c   :  { %v2650_v29 = vmul.f32 -1.442695, %v309_v28 }
 0x17d   :  { %v407_v54 = vpop.f32.mrf.mxu0 }
 0x17e   :  { %3128 = vpow2.f32 %v2650_v29 }
 0x17f   :  { %v2859_v55 = vpop.f32.mrf.mxu0 }
 0x18b   :  { %v3129_v30 = vpop.eup %3128 }
 0x18c   :  { %v313_v31 = vadd.f32 1.0, %v3129_v30 }
 0x18e   :  { %3130 = vrcp.f32 %v313_v31 }
 0x19b   :  { %v3131_v33 = vpop.eup %3130 }
 0x19c   :  { %v320_v34 = vmul.f32 %v3131_v33, %v318_v32  ;;  %v327_v49 = vsub.f32 1.0, %v3131_v33 }
 0x19e   :  { %322 = vrot.lane.b32.xlu1 %v320_v34, %s3355_s6 }
 0x1a2   :  { %333 = vrot.lane.b32.xlu1 %v227_v10, %s3356_s4 }
 0x1a6   :  { %513 = vrot.lane.b32.xlu1 %v2656_v47, %s3357_s2 }
 0x210   :  { %v323_v35 = vpop.permute.xlu1 %322 }
 0x211   :  { %v325_v36 = vadd.f32 %v323_v35, %v3521_v27 }
 0x213   :  { %3132 = vtanh.f32 %v325_v36 }
 0x214   :  { %v334_v48 = vpop.permute.xlu1 %333 }
 0x215   :  { %v336_v51 = vmul.f32 %v3131_v33, %v334_v48 }
 0x218   :  { %v3607_v57 = vpop.permute.xlu1 %513 }
 0x220   :  { %v3133_v46 = vpop.eup %3132 }
 0x221   :  { %329 = vrot.lane.b32.xlu0 %v3133_v46, %s3357_s2 }
 0x293   :  { %v330_v50 = vpop.permute.xlu0 %329 }
 0x294   :  { %v332_v52 = vmul.f32 %v330_v50, %v327_v49 }
 0x296   :  { %v3581_v53 = vadd.f32 %v336_v51, %v332_v52 }
 0x298   :  { %412 = vrot.lane.b32.xlu0 %v3581_v53, %s3357_s2  ;;  %v635_v47 = vrot.slane %v3581_v53, 6 }
 0x30a   :  { %v413_v56 = vpop.permute.xlu0 %412 }
 0x30b   :  { %2869 = vmatmul.mubr.msk.f32.vlgmr.msra.gmra.mxu1 %vm129_vm1, %v413_v56  ;;  %2880 = vmatmul.mubr.msk.f32.vlgmr.msra.gmra.mxu0 %vm129_vm1, %v413_v56 }
 0x30c   :  { %2883 = vmatpush3.msra.mxu1 %v3527_v37  ;;  %2890 = vmatprep.mubr.msk.f32.mxu1 %vm3354_vm0, %v3353_v1 }
 0x30d   :  { %2884 = vmatprep.subr.mxu1 %v3353_v1  ;;  %2894 = vmatpush3.msra.mxu0 %v3532_v39 }
 0x30e   :  { %2885 = vmatpush3.msra.mxu1 %v3529_v38  ;;  %2895 = vmatprep.subr.mxu0 %v3353_v1 }
 0x30f   :  { %2886 = vmatprep.subr.mxu1 %v3353_v1  ;;  %2896 = vmatpush3.msra.mxu0 %v3538_v41 }
 0x310   :  { %2887 = vmatpush3.msra.mxu1 %v3535_v40  ;;  %2897 = vmatprep.subr.mxu0 %v3353_v1 }
 0x311   :  { %2888 = vmatprep.subr.mxu1 %v3353_v1  ;;  %2898 = vmatpush3.msra.mxu0 %v3542_v42 }
 0x312   :  { %2889 = vmatpush3.msra.mxu1 %v3545_v43  ;;  %2899 = vmatprep.subr.mxu0 %v3353_v1 }
 0x313   :  { %2904 = vmatprep.subr.mxu1 %v3353_v1  ;;  %2900 = vmatpush3.msra.mxu0 %v3559_v45 }
 0x314   :  { %2901 = vmatprep.mubr.msk.f32.mxu0 %vm3354_vm0, %v3353_v1  ;;  %2915 = vmatprep.subr.mxu0 %v3353_v1 }
 0x3cb   :  { %v482_v58 = vpop.f32.mrf.mxu1  ;;  %v605_v59 = vpop.f32.mrf.mxu0 }
 0x3cc   :  { %v483_v60 = vadd.f32 %v482_v58, %v407_v54  ;;  %v606_v61 = vadd.f32 %v3512_v19, %v605_v59 }
 0x3cd   :  { %v2870_v62 = vpop.f32.mrf.mxu1  ;;  %v2881_v63 = vpop.f32.mrf.mxu0 }
 0x3ce   :  { %v610_v0 = vrot.slane %v606_v61, 6  ;;  %v516_v2 = vadd.f32 %v3607_v57, %v483_v60  ;;  %v492_v8 = vadd.f32 %v3620_v7, %v483_v60 }
 0x3d0   :  { %619 = vrot.lane.b32.xlu1 %v610_v0, %s3355_s6  ;;  %518 = vrot.lane.b32.xlu0 %v516_v2, %s3356_s4  ;;  %v612_v10 = vadd.f32 %v610_v0, %v3521_v27  ;;  %v2654_v11 = vmul.f32 -1.442695, %v492_v8 }
 0x3d2   :  { %v2658_v12 = vmul.f32 -1.442695, %v612_v10  ;;  %3134 = vpow2.f32 %v2654_v11 }
 0x3d4   :  { %504 = vrot.lane.b32.xlu0 %v2655_v5, %s3355_s6  ;;  %3136 = vpow2.f32 %v2658_v12 }
 0x3df   :  { %v3135_v13 = vpop.eup %3134 }
 0x3e0   :  { %v496_v15 = vadd.f32 1.0, %v3135_v13 }
 0x3e1   :  { %v3137_v14 = vpop.eup %3136 }
 0x3e2   :  { %v616_v16 = vadd.f32 1.0, %v3137_v14  ;;  %3138 = vrcp.f32 %v496_v15 }
 0x3e4   :  { %3140 = vrcp.f32 %v616_v16 }
 0x3ef   :  { %v3139_v17 = vpop.eup %3138 }
 0x3f0   :  { %v528_v35 = vsub.f32 1.0, %v3139_v17 }
 0x3f1   :  { %v3141_v18 = vpop.eup %3140 }
 0x3f2   :  { %v629_v49 = vsub.f32 1.0, %v3141_v18  ;;  %v637_v51 = vmul.f32 %v3141_v18, %v635_v47 }
 0x442   :  { %v519_v20 = vpop.permute.xlu0 %518  ;;  %v620_v21 = vpop.permute.xlu1 %619 }
 0x443   :  { %v521_v22 = vmul.f32 %v3139_v17, %v519_v20  ;;  %v622_v23 = vmul.f32 %v3141_v18, %v620_v21 }
 0x445   :  { %523 = vrot.lane.b32.xlu1 %v521_v22, %s3355_s6  ;;  %624 = vrot.lane.b32.xlu0 %v622_v23, %s3355_s6 }
 0x446   :  { %v3628_v24 = vpop.permute.xlu0 %504 }
 0x447   :  { %v507_v26 = vadd.f32 %v3628_v24, %v483_v60 }
 0x449   :  { %534 = vrot.lane.b32.xlu0 %v3552_v44, %s3356_s4 }
 0x4b7   :  { %v524_v28 = vpop.permute.xlu1 %523  ;;  %v625_v29 = vpop.permute.xlu0 %624 }
 0x4b8   :  { %v526_v30 = vadd.f32 %v524_v28, %v507_v26  ;;  %v627_v31 = vadd.f32 %v625_v29, %v3521_v27 }
 0x4ba   :  { %3142 = vtanh.f32 %v526_v30 }
 0x4bb   :  { %3144 = vtanh.f32 %v627_v31  ;;  %v535_v34 = vpop.permute.xlu0 %534 }
 0x4bc   :  { %v537_v44 = vmul.f32 %v3139_v17, %v535_v34 }
 0x4c7   :  { %v3143_v32 = vpop.eup %3142 }
 0x4c8   :  { %530 = vrot.lane.b32.xlu1 %v3143_v32, %s3357_s2  ;;  %v3145_v33 = vpop.eup %3144 }
 0x4cc   :  { %631 = vrot.lane.b32.xlu1 %v3145_v33, %s3357_s2 }
 0x53a   :  { %v531_v36 = vpop.permute.xlu1 %530 }
 0x53b   :  { %v533_v46 = vmul.f32 %v531_v36, %v528_v35 }
 0x53d   :  { %v3635_v48 = vadd.f32 %v537_v44, %v533_v46 }
 0x53e   :  { %v632_v50 = vpop.permute.xlu1 %631 }
 0x53f   :  { %v634_v52 = vmul.f32 %v632_v50, %v629_v49  ;;  %640 = vrot.lane.b32.xlu0 %v3635_v48, %s3357_s2 }
 0x541   :  { %v3639_v54 = vadd.f32 %v637_v51, %v634_v52 }
 0x543   :  { %v715_v55 = vrot.slane %v3639_v54, 2  ;;  %v914_v44 = vrot.slane %v3639_v54, 6 }
 0x545   :  { %716 = vrot.lane.b32.xlu1 %v715_v55, %s3357_s2 }
 0x5b1   :  { %v641_v56 = vpop.permute.xlu0 %640 }
 0x5b2   :  { %2891 = vmatmul.mubr.msk.f32.vlgmr.msra.gmra.mxu1 %vm129_vm1, %v641_v56 }
 0x5b3   :  { %2905 = vmatpush3.msra.mxu1 %v3465_v3  ;;  %2912 = vmatprep.mubr.msk.f32.mxu1 %vm3354_vm0, %v3353_v1 }
 0x5b4   :  { %2906 = vmatprep.subr.mxu1 %v3353_v1 }
 0x5b5   :  { %2907 = vmatpush3.msra.mxu1 %v3468_v4 }
 0x5b6   :  { %2908 = vmatprep.subr.mxu1 %v3353_v1 }
 0x5b7   :  { %2909 = vmatpush3.msra.mxu1 %v3474_v6  ;;  %v717_v53 = vpop.permute.xlu1 %716 }
 0x5b8   :  { %2910 = vmatprep.subr.mxu1 %v3353_v1  ;;  %2902 = vmatmul.mubr.msk.f32.vlgmr.msra.gmra.mxu0 %vm129_vm1, %v717_v53 }
 0x5b9   :  { %2911 = vmatpush3.msra.mxu1 %v3484_v9  ;;  %2916 = vmatpush3.msra.mxu0 %v3527_v37 }
 0x5ba   :  { %2913 = vmatmul.mubr.msk.f32.vlgmr.msra.gmra.mxu1 %vm129_vm1, %v717_v53  ;;  %2917 = vmatprep.subr.mxu0 %v3353_v1 }
 0x5bb   :  { %2918 = vmatpush3.msra.mxu0 %v3529_v38  ;;  %2926 = vmatprep.subr.mxu1 %v3353_v1 }
 0x5bc   :  { %2919 = vmatprep.subr.mxu0 %v3353_v1  ;;  %2927 = vmatpush3.msra.mxu1 %v3532_v39 }
 0x5bd   :  { %2920 = vmatpush3.msra.mxu0 %v3535_v40  ;;  %2928 = vmatprep.subr.mxu1 %v3353_v1 }
 0x5be   :  { %2921 = vmatprep.subr.mxu0 %v3353_v1  ;;  %2929 = vmatpush3.msra.mxu1 %v3538_v41 }
 0x5bf   :  { %2922 = vmatpush3.msra.mxu0 %v3545_v43  ;;  %2923 = vmatprep.mubr.msk.f32.mxu0 %vm3354_vm0, %v3353_v1 }
 0x5c0   :  { %2930 = vmatprep.subr.mxu1 %v3353_v1  ;;  %2937 = vmatprep.subr.mxu0 %v3353_v1 }
 0x5c1   :  { %2931 = vmatpush3.msra.mxu1 %v3542_v42  ;;  %2934 = vmatprep.mubr.msk.f32.mxu1 %vm3354_vm0, %v3353_v1 }
 0x5c2   :  { %2932 = vmatprep.subr.mxu1 %v3353_v1 }
 0x5c3   :  { %2933 = vmatpush3.msra.mxu1 %v3559_v45 }
 0x5c4   :  { %2948 = vmatprep.subr.mxu1 %v3353_v1 }
 0x672   :  { %v710_v58 = vpop.f32.mrf.mxu1 }
 0x674   :  { %v2892_v59 = vpop.f32.mrf.mxu1 }
 0x678   :  { %v786_v60 = vpop.f32.mrf.mxu0 }
 0x679   :  { %v787_v61 = vadd.f32 %v786_v60, %v710_v58 }
 0x67a   :  { %v884_v62 = vpop.f32.mrf.mxu1  ;;  %v2903_v63 = vpop.f32.mrf.mxu0 }
 0x67b   :  { %v885_v0 = vadd.f32 %v3512_v19, %v884_v62  ;;  %v798_v2 = vadd.f32 %v787_v61, %v3607_v57  ;;  %v790_v10 = vadd.f32 %v3620_v7, %v787_v61  ;;  %v797_v28 = vadd.f32 %v787_v61, %v3628_v24 }
 0x67c   :  { %v2914_v5 = vpop.f32.mrf.mxu1 }
 0x67d   :  { %v889_v8 = vrot.slane %v885_v0, 4  ;;  %800 = vrot.lane.b32.xlu0 %v798_v2, %s3356_s4  ;;  %v2661_v12 = vmul.f32 -1.442695, %v790_v10 }
 0x67f   :  { %898 = vrot.lane.b32.xlu1 %v889_v8, %s3355_s6  ;;  %v891_v11 = vadd.f32 %v889_v8, %v3521_v27  ;;  %3146 = vpow2.f32 %v2661_v12 }
 0x681   :  { %v2663_v13 = vmul.f32 -1.442695, %v891_v11 }
 0x683   :  { %3148 = vpow2.f32 %v2663_v13 }
 0x68c   :  { %v3147_v14 = vpop.eup %3146 }
 0x68d   :  { %v794_v16 = vadd.f32 1.0, %v3147_v14 }
 0x68f   :  { %3150 = vrcp.f32 %v794_v16 }
 0x690   :  { %v3149_v15 = vpop.eup %3148 }
 0x691   :  { %v895_v17 = vadd.f32 1.0, %v3149_v15 }
 0x693   :  { %3152 = vrcp.f32 %v895_v17 }
 0x69c   :  { %v3151_v18 = vpop.eup %3150 }
 0x69d   :  { %v810_v35 = vsub.f32 1.0, %v3151_v18  ;;  %v816_v46 = vmul.f32 %v3151_v18, %v3635_v48 }
 0x6a0   :  { %v3153_v22 = vpop.eup %3152 }
 0x6a1   :  { %v908_v49 = vsub.f32 1.0, %v3153_v22  ;;  %v916_v52 = vmul.f32 %v3153_v22, %v914_v44 }
 0x6ef   :  { %v801_v20 = vpop.permute.xlu0 %800 }
 0x6f0   :  { %v803_v21 = vmul.f32 %v3151_v18, %v801_v20 }
 0x6f1   :  { %v899_v23 = vpop.permute.xlu1 %898 }
 0x6f2   :  { %v901_v26 = vmul.f32 %v3153_v22, %v899_v23  ;;  %805 = vrot.lane.b32.xlu0 %v803_v21, %s3355_s6 }
 0x6f4   :  { %903 = vrot.lane.b32.xlu1 %v901_v26, %s3355_s6 }
 0x764   :  { %v806_v29 = vpop.permute.xlu0 %805 }
 0x765   :  { %v808_v30 = vadd.f32 %v806_v29, %v797_v28 }
 0x766   :  { %v904_v31 = vpop.permute.xlu1 %903 }
 0x767   :  { %3154 = vtanh.f32 %v808_v30  ;;  %v906_v32 = vadd.f32 %v904_v31, %v3521_v27 }
 0x769   :  { %3156 = vtanh.f32 %v906_v32 }
 0x774   :  { %v3155_v33 = vpop.eup %3154 }
 0x775   :  { %812 = vrot.lane.b32.xlu0 %v3155_v33, %s3357_s2 }
 0x776   :  { %v3157_v34 = vpop.eup %3156 }
 0x777   :  { %910 = vrot.lane.b32.xlu1 %v3157_v34, %s3357_s2 }
 0x7e7   :  { %v813_v36 = vpop.permute.xlu0 %812 }
 0x7e8   :  { %v815_v47 = vmul.f32 %v813_v36, %v810_v35 }
 0x7e9   :  { %v911_v50 = vpop.permute.xlu1 %910 }
 0x7ea   :  { %v3690_v51 = vadd.f32 %v816_v46, %v815_v47  ;;  %v913_v55 = vmul.f32 %v911_v50, %v908_v49 }
 0x7ec   :  { %v3692_v56 = vadd.f32 %v916_v52, %v913_v55  ;;  %919 = vrot.lane.b32.xlu0 %v3690_v51, %s3357_s2 }
 0x7ee   :  { %v994_v53 = vrot.slane %v3692_v56, 4  ;;  %v1193_v49 = vrot.slane %v3692_v56, 6 }
 0x7f0   :  { %995 = vrot.lane.b32.xlu1 %v994_v53, %s3357_s2 }
 0x85e   :  { %v920_v58 = vpop.permute.xlu0 %919 }
 0x85f   :  { %2924 = vmatmul.mubr.msk.f32.vlgmr.msra.gmra.mxu0 %vm129_vm1, %v920_v58 }
 0x860   :  { %2938 = vmatpush3.msra.mxu0 %v3465_v3  ;;  %2945 = vmatprep.mubr.msk.f32.mxu0 %vm3354_vm0, %v3353_v1 }
 0x861   :  { %2939 = vmatprep.subr.mxu0 %v3353_v1 }
 0x862   :  { %v996_v54 = vpop.permute.xlu1 %995  ;;  %2940 = vmatpush3.msra.mxu0 %v3468_v4 }
 0x863   :  { %2935 = vmatmul.mubr.msk.f32.vlgmr.msra.gmra.mxu1 %vm129_vm1, %v996_v54  ;;  %2941 = vmatprep.subr.mxu0 %v3353_v1 }
 0x864   :  { %2942 = vmatpush3.msra.mxu0 %v3474_v6  ;;  %2949 = vmatpush3.msra.mxu1 %v3527_v37 }
 0x865   :  { %2943 = vmatprep.subr.mxu0 %v3353_v1  ;;  %2950 = vmatprep.subr.mxu1 %v3353_v1 }
 0x866   :  { %2944 = vmatpush3.msra.mxu0 %v3484_v9  ;;  %2951 = vmatpush3.msra.mxu1 %v3529_v38 }
 0x867   :  { %2946 = vmatmul.mubr.msk.f32.vlgmr.msra.gmra.mxu0 %vm129_vm1, %v996_v54  ;;  %2952 = vmatprep.subr.mxu1 %v3353_v1 }
 0x868   :  { %2953 = vmatpush3.msra.mxu1 %v3535_v40  ;;  %2959 = vmatprep.subr.mxu0 %v3353_v1 }
 0x869   :  { %2954 = vmatprep.subr.mxu1 %v3353_v1  ;;  %2956 = vmatprep.mubr.msk.f32.mxu1 %vm3354_vm0, %v3353_v1 }
 0x86a   :  { %2955 = vmatpush3.msra.mxu1 %v3545_v43  ;;  %2960 = vmatpush3.msra.mxu0 %v3532_v39 }
 0x86b   :  { %2970 = vmatprep.subr.mxu1 %v3353_v1  ;;  %2961 = vmatprep.subr.mxu0 %v3353_v1 }
 0x86c   :  { %2962 = vmatpush3.msra.mxu0 %v3538_v41  ;;  %2967 = vmatprep.mubr.msk.f32.mxu0 %vm3354_vm0, %v3353_v1 }
 0x86d   :  { %2963 = vmatprep.subr.mxu0 %v3353_v1 }
 0x86e   :  { %2964 = vmatpush3.msra.mxu0 %v3542_v42 }
 0x86f   :  { %2965 = vmatprep.subr.mxu0 %v3353_v1 }
 0x870   :  { %2966 = vmatpush3.msra.mxu0 %v3559_v45 }
 0x871   :  { %2981 = vmatprep.subr.mxu0 %v3353_v1 }
 0x91f   :  { %v989_v59 = vpop.f32.mrf.mxu0 }
 0x921   :  { %v2925_v60 = vpop.f32.mrf.mxu0 }
 0x923   :  { %v1065_v61 = vpop.f32.mrf.mxu1 }
 0x924   :  { %v1066_v62 = vadd.f32 %v1065_v61, %v989_v59 }
 0x925   :  { %v2936_v63 = vpop.f32.mrf.mxu1 }
 0x926   :  { %v1077_v0 = vadd.f32 %v1066_v62, %v3607_v57  ;;  %v1069_v11 = vadd.f32 %v3620_v7, %v1066_v62  ;;  %v1076_v29 = vadd.f32 %v1066_v62, %v3628_v24 }
 0x927   :  { %v1163_v2 = vpop.f32.mrf.mxu0 }
 0x928   :  { %v1164_v5 = vadd.f32 %v3512_v19, %v1163_v2  ;;  %1079 = vrot.lane.b32.xlu1 %v1077_v0, %s3356_s4  ;;  %v2666_v12 = vmul.f32 -1.442695, %v1069_v11 }
 0x929   :  { %v2947_v8 = vpop.f32.mrf.mxu0 }
 0x92a   :  { %v1168_v10 = vrot.slane %v1164_v5, 2  ;;  %3158 = vpow2.f32 %v2666_v12 }
 0x92c   :  { %1177 = vrot.lane.b32.xlu0 %v1168_v10, %s3355_s6  ;;  %v1170_v13 = vadd.f32 %v1168_v10, %v3521_v27 }
 0x92e   :  { %v2668_v14 = vmul.f32 -1.442695, %v1170_v13 }
 0x930   :  { %3160 = vpow2.f32 %v2668_v14 }
 0x937   :  { %v3159_v15 = vpop.eup %3158 }
 0x938   :  { %v1073_v16 = vadd.f32 1.0, %v3159_v15 }
 0x93a   :  { %3162 = vrcp.f32 %v1073_v16 }
 0x93d   :  { %v3161_v17 = vpop.eup %3160 }
 0x93e   :  { %v1174_v18 = vadd.f32 1.0, %v3161_v17 }
 0x940   :  { %3164 = vrcp.f32 %v1174_v18 }
 0x947   :  { %v3163_v20 = vpop.eup %3162 }
 0x948   :  { %v1089_v36 = vsub.f32 1.0, %v3163_v20  ;;  %v1095_v46 = vmul.f32 %v3163_v20, %v3690_v51 }
 0x94d   :  { %v3165_v23 = vpop.eup %3164 }
 0x94e   :  { %v1187_v52 = vsub.f32 1.0, %v3165_v23  ;;  %v1195_v53 = vmul.f32 %v3165_v23, %v1193_v49 }
 0x99a   :  { %v1080_v21 = vpop.permute.xlu1 %1079 }
 0x99b   :  { %v1082_v22 = vmul.f32 %v3163_v20, %v1080_v21 }
 0x99d   :  { %1084 = vrot.lane.b32.xlu1 %v1082_v22, %s3355_s6 }
 0x99e   :  { %v1178_v26 = vpop.permute.xlu0 %1177 }
 0x99f   :  { %v1180_v28 = vmul.f32 %v3165_v23, %v1178_v26 }
 0x9a1   :  { %1182 = vrot.lane.b32.xlu0 %v1180_v28, %s3355_s6 }
 0xa0f   :  { %v1085_v30 = vpop.permute.xlu1 %1084 }
 0xa10   :  { %v1087_v31 = vadd.f32 %v1085_v30, %v1076_v29 }
 0xa12   :  { %3166 = vtanh.f32 %v1087_v31 }
 0xa13   :  { %v1183_v32 = vpop.permute.xlu0 %1182 }
 0xa14   :  { %v1185_v33 = vadd.f32 %v1183_v32, %v3521_v27 }
 0xa16   :  { %3168 = vtanh.f32 %v1185_v33 }
 0xa1f   :  { %v3167_v34 = vpop.eup %3166 }
 0xa20   :  { %1091 = vrot.lane.b32.xlu1 %v3167_v34, %s3357_s2 }
 0xa23   :  { %v3169_v35 = vpop.eup %3168 }
 0xa24   :  { %1189 = vrot.lane.b32.xlu0 %v3169_v35, %s3357_s2 }
 0xa92   :  { %v1092_v44 = vpop.permute.xlu1 %1091 }
 0xa93   :  { %v1094_v47 = vmul.f32 %v1092_v44, %v1089_v36 }
 0xa95   :  { %v3745_v50 = vadd.f32 %v1095_v46, %v1094_v47 }
 0xa96   :  { %v1190_v55 = vpop.permute.xlu0 %1189 }
 0xa97   :  { %v1192_v27 = vmul.f32 %v1190_v55, %v1187_v52  ;;  %1198 = vrot.lane.b32.xlu0 %v3745_v50, %s3357_s2 }
 0xa99   :  { %v3749_v58 = vadd.f32 %v1195_v53, %v1192_v27 }
 0xa9b   :  { %v1273_v54 = vrot.slane %v3749_v58, 6 }
 0xa9d   :  { %1274 = vrot.lane.b32.xlu1 %v1273_v54, %s3357_s2 }
 0xb09   :  { %v1199_v59 = vpop.permute.xlu0 %1198 }
 0xb0a   :  { %2957 = vmatmul.mubr.msk.f32.vlgmr.msra.gmra.mxu1 %vm129_vm1, %v1199_v59 }
 0xb0b   :  { %2971 = vmatpush3.msra.mxu1 %v3465_v3  ;;  %2978 = vmatprep.mubr.msk.f32.mxu1 %vm3354_vm0, %v3353_v1 }
 0xb0c   :  { %2972 = vmatprep.subr.mxu1 %v3353_v1 }
 0xb0d   :  { %2973 = vmatpush3.msra.mxu1 %v3468_v4 }
 0xb0e   :  { %2974 = vmatprep.subr.mxu1 %v3353_v1 }
 0xb0f   :  { %2975 = vmatpush3.msra.mxu1 %v3474_v6  ;;  %v1275_v56 = vpop.permute.xlu1 %1274 }
 0xb10   :  { %2976 = vmatprep.subr.mxu1 %v3353_v1  ;;  %2968 = vmatmul.mubr.msk.f32.vlgmr.msra.gmra.mxu0 %vm129_vm1, %v1275_v56 }
 0xb11   :  { %2977 = vmatpush3.msra.mxu1 %v3484_v9  ;;  %2982 = vmatpush3.msra.mxu0 %v3527_v37 }
 0xb12   :  { %2979 = vmatmul.mubr.msk.f32.vlgmr.msra.gmra.mxu1 %vm129_vm1, %v1275_v56  ;;  %2992 = vmatprep.subr.mxu1 %v3353_v1 }
 0xb13   :  { %2993 = vmatpush3.msra.mxu1 %v3532_v39  ;;  %2983 = vmatprep.subr.mxu0 %v3353_v1 }
 0xb14   :  { %2994 = vmatprep.subr.mxu1 %v3353_v1  ;;  %2984 = vmatpush3.msra.mxu0 %v3529_v38 }
 0xb15   :  { %2995 = vmatpush3.msra.mxu1 %v3538_v41  ;;  %2985 = vmatprep.subr.mxu0 %v3353_v1 }
 0xb16   :  { %2996 = vmatprep.subr.mxu1 %v3353_v1  ;;  %2986 = vmatpush3.msra.mxu0 %v3535_v40 }
 0xb17   :  { %2997 = vmatpush3.msra.mxu1 %v3542_v42  ;;  %2987 = vmatprep.subr.mxu0 %v3353_v1 }
 0xb18   :  { %2998 = vmatprep.subr.mxu1 %v3353_v1  ;;  %2988 = vmatpush3.msra.mxu0 %v3545_v43 }
 0xb19   :  { %2999 = vmatpush3.msra.mxu1 %v3559_v45  ;;  %3000 = vmatprep.mubr.msk.f32.mxu1 %vm3354_vm0, %v3353_v1 }
 0xb1a   :  { %2989 = vmatprep.mubr.msk.f32.mxu0 %vm3354_vm0, %v3353_v1  ;;  %3003 = vmatprep.subr.mxu0 %v3353_v1 }
 0xb1b   :  { %3014 = vmatprep.subr.mxu1 %v3353_v1 }
 0xbca   :  { %v1268_v60 = vpop.f32.mrf.mxu1 }
 0xbcc   :  { %v2958_v61 = vpop.f32.mrf.mxu1 }
 0xbd0   :  { %v1344_v62 = vpop.f32.mrf.mxu0 }
 0xbd1   :  { %v1345_v63 = vadd.f32 %v1344_v62, %v1268_v60 }
 0xbd2   :  { %v1442_v0 = vpop.f32.mrf.mxu1  ;;  %v2969_v2 = vpop.f32.mrf.mxu0 }
 0xbd3   :  { %v1443_v5 = vadd.f32 %v3512_v19, %v1442_v0  ;;  %v1356_v8 = vadd.f32 %v1345_v63, %v3607_v57  ;;  %v1348_v11 = vadd.f32 %v3620_v7, %v1345_v63  ;;  %v1355_v29 = vadd.f32 %v1345_v63, %v3628_v24 }
 0xbd4   :  { %v2980_v10 = vpop.f32.mrf.mxu1 }
 0xbd5   :  { %1454 = vrot.lane.b32.xlu1 %v1443_v5, %s3355_s6  ;;  %1358 = vrot.lane.b32.xlu0 %v1356_v8, %s3356_s4  ;;  %v1446_v12 = vadd.f32 %v1443_v5, %v3519_v25  ;;  %v2671_v13 = vmul.f32 -1.442695, %v1348_v11 }
 0xbd7   :  { %v2673_v14 = vmul.f32 -1.442695, %v1446_v12  ;;  %3170 = vpow2.f32 %v2671_v13 }
 0xbd9   :  { %3172 = vpow2.f32 %v2673_v14 }
 0xbe4   :  { %v3171_v15 = vpop.eup %3170 }
 0xbe5   :  { %v1352_v17 = vadd.f32 1.0, %v3171_v15 }
 0xbe6   :  { %v3173_v16 = vpop.eup %3172 }
 0xbe7   :  { %v1450_v18 = vadd.f32 1.0, %v3173_v16  ;;  %3174 = vrcp.f32 %v1352_v17 }
 0xbe9   :  { %3176 = vrcp.f32 %v1450_v18 }
 0xbf4   :  { %v3175_v20 = vpop.eup %3174 }
 0xbf5   :  { %v1368_v46 = vsub.f32 1.0, %v3175_v20  ;;  %v1374_v55 = vmul.f32 %v3175_v20, %v3745_v50 }
 0xbf6   :  { %v3177_v21 = vpop.eup %3176 }
 0xbf7   :  { %v1464_v36 = vsub.f32 1.0, %v3177_v21  ;;  %v1471_v47 = vmul.f32 %v3177_v21, %v1273_v54 }
 0xc47   :  { %v1455_v22 = vpop.permute.xlu1 %1454  ;;  %v1359_v23 = vpop.permute.xlu0 %1358 }
 0xc48   :  { %v1457_v26 = vmul.f32 %v3177_v21, %v1455_v22  ;;  %v1361_v28 = vmul.f32 %v3175_v20, %v1359_v23 }
 0xc4a   :  { %1459 = vrot.lane.b32.xlu1 %v1457_v26, %s3355_s6  ;;  %1363 = vrot.lane.b32.xlu0 %v1361_v28, %s3355_s6 }
 0xcbc   :  { %v1460_v30 = vpop.permute.xlu1 %1459  ;;  %v1364_v31 = vpop.permute.xlu0 %1363 }
 0xcbd   :  { %v1462_v32 = vadd.f32 %v1460_v30, %v3519_v25  ;;  %v1366_v33 = vadd.f32 %v1364_v31, %v1355_v29 }
 0xcbf   :  { %3178 = vtanh.f32 %v1462_v32 }
 0xcc0   :  { %3180 = vtanh.f32 %v1366_v33 }
 0xccc   :  { %v3179_v34 = vpop.eup %3178 }
 0xccd   :  { %v3181_v35 = vpop.eup %3180  ;;  %1466 = vrot.lane.b32.xlu1 %v3179_v34, %s3357_s2 }
 0xcce   :  { %1370 = vrot.lane.b32.xlu0 %v3181_v35, %s3357_s2 }
 0xd3f   :  { %v1467_v44 = vpop.permute.xlu1 %1466 }
 0xd40   :  { %v1469_v49 = vmul.f32 %v1467_v44, %v1464_v36  ;;  %v1371_v52 = vpop.permute.xlu0 %1370 }
 0xd41   :  { %v1373_v53 = vmul.f32 %v1371_v52, %v1368_v46 }
 0xd42   :  { %v3803_v27 = vadd.f32 %v1471_v47, %v1469_v49 }
 0xd43   :  { %v3805_v59 = vadd.f32 %v1374_v55, %v1373_v53 }
 0xd44   :  { %1549 = vrot.lane.b32.xlu1 %v3803_v27, %s3357_s2  ;;  %v1747_v36 = vrot.slane %v3803_v27, 6  ;;  %v3873_v27 = vld [vmem:[#allocation2 + $0x10] sm:$0xff] }
 0xd45   :  { %1474 = vrot.lane.b32.xlu0 %v3805_v59, %s3357_s2 }
 0xdb6   :  { %v1550_v56 = vpop.permute.xlu1 %1549 }
 0xdb7   :  { %3001 = vmatmul.mubr.msk.f32.vlgmr.msra.gmra.mxu1 %vm129_vm1, %v1550_v56  ;;  %v1475_v58 = vpop.permute.xlu0 %1474 }
 0xdb8   :  { %2990 = vmatmul.mubr.msk.f32.vlgmr.msra.gmra.mxu0 %vm129_vm1, %v1475_v58  ;;  %3015 = vmatpush3.msra.mxu1 %v3527_v37  ;;  %v3877_v58 = vld [vmem:[#allocation2 + $0x8] sm:$0xff] }
 0xdb9   :  { %3004 = vmatpush3.msra.mxu0 %v3465_v3  ;;  %3011 = vmatprep.mubr.msk.f32.mxu0 %vm3354_vm0, %v3353_v1 }
 0xdba   :  { %3005 = vmatprep.subr.mxu0 %v3353_v1  ;;  %3016 = vmatprep.subr.mxu1 %v3353_v1 }
 0xdbb   :  { %3006 = vmatpush3.msra.mxu0 %v3468_v4  ;;  %3017 = vmatpush3.msra.mxu1 %v3529_v38 }
 0xdbc   :  { %3007 = vmatprep.subr.mxu0 %v3353_v1  ;;  %3018 = vmatprep.subr.mxu1 %v3353_v1 }
 0xdbd   :  { %3008 = vmatpush3.msra.mxu0 %v3474_v6  ;;  %3019 = vmatpush3.msra.mxu1 %v3535_v40 }
 0xdbe   :  { %3009 = vmatprep.subr.mxu0 %v3353_v1  ;;  %3020 = vmatprep.subr.mxu1 %v3353_v1 }
 0xdbf   :  { %3010 = vmatpush3.msra.mxu0 %v3484_v9  ;;  %3021 = vmatpush3.msra.mxu1 %v3545_v43 }
 0xdc0   :  { %3012 = vmatmul.mubr.msk.f32.vlgmr.msra.gmra.mxu0 %vm129_vm1, %v1550_v56  ;;  %3022 = vmatprep.mubr.msk.f32.mxu1 %vm3354_vm0, %v3353_v1  ;;  %v3867_v56 = vld [vmem:[#allocation2 + $0x18] sm:$0xff] }
 0xdc1   :  { %3025 = vmatprep.subr.mxu0 %v3353_v1  ;;  %3036 = vmatprep.subr.mxu1 %v3353_v1 }
 0xdc2   :  { %3026 = vmatpush3.msra.mxu0 %v3532_v39  ;;  %3033 = vmatprep.mubr.msk.f32.mxu0 %vm3354_vm0, %v3353_v1 }
 0xdc3   :  { %3027 = vmatprep.subr.mxu0 %v3353_v1 }
 0xdc4   :  { %3028 = vmatpush3.msra.mxu0 %v3538_v41 }
 0xdc5   :  { %3029 = vmatprep.subr.mxu0 %v3353_v1 }
 0xdc6   :  { %3030 = vmatpush3.msra.mxu0 %v3542_v42 }
 0xdc7   :  { %3031 = vmatprep.subr.mxu0 %v3353_v1 }
 0xdc8   :  { %3032 = vmatpush3.msra.mxu0 %v3559_v45 }
 0xdc9   :  { %3047 = vmatprep.subr.mxu0 %v3353_v1 }
 0xe77   :  { %v1619_v3 = vpop.f32.mrf.mxu1 }
 0xe78   :  { %v1544_v4 = vpop.f32.mrf.mxu0 }
 0xe79   :  { %v1620_v6 = vadd.f32 %v1619_v3, %v1544_v4  ;;  %v3002_v9 = vpop.f32.mrf.mxu1  ;;  %v3881_v3 = vld [vmem:[#allocation2] sm:$0xff] }
 0xe7a   :  { %v2991_v54 = vpop.f32.mrf.mxu0 }
 0xe7b   :  { %v1631_v60 = vadd.f32 %v1620_v6, %v3607_v57  ;;  %v1623_v2 = vadd.f32 %v3620_v7, %v1620_v6  ;;  %v1630_v21 = vadd.f32 %v1620_v6, %v3628_v24 }
 0xe7d   :  { %1633 = vrot.lane.b32.xlu0 %v1631_v60, %s3356_s4  ;;  %v2676_v5 = vmul.f32 -1.442695, %v1623_v2 }
 0xe7f   :  { %3182 = vpow2.f32 %v2676_v5 }
 0xe80   :  { %v1717_v61 = vpop.f32.mrf.mxu0 }
 0xe81   :  { %v1718_v62 = vadd.f32 %v3512_v19, %v1717_v61 }
 0xe82   :  { %v3013_v63 = vpop.f32.mrf.mxu0 }
 0xe83   :  { %v1722_v0 = vrot.slane %v1718_v62, 6 }
 0xe85   :  { %1731 = vrot.lane.b32.xlu1 %v1722_v0, %s3355_s6  ;;  %v1724_v8 = vadd.f32 %v1722_v0, %v3519_v25 }
 0xe87   :  { %v2678_v10 = vmul.f32 -1.442695, %v1724_v8 }
 0xe89   :  { %3184 = vpow2.f32 %v2678_v10 }
 0xe8c   :  { %v3183_v11 = vpop.eup %3182 }
 0xe8d   :  { %v1627_v12 = vadd.f32 1.0, %v3183_v11 }
 0xe8f   :  { %3186 = vrcp.f32 %v1627_v12 }
 0xe96   :  { %v3185_v13 = vpop.eup %3184 }
 0xe97   :  { %v1728_v14 = vadd.f32 1.0, %v3185_v13 }
 0xe99   :  { %3188 = vrcp.f32 %v1728_v14 }
 0xe9c   :  { %v3187_v15 = vpop.eup %3186 }
 0xe9d   :  { %v1643_v31 = vsub.f32 1.0, %v3187_v15  ;;  %v1649_v33 = vmul.f32 %v3187_v15, %v3805_v59 }
 0xea6   :  { %v3189_v17 = vpop.eup %3188 }
 0xea7   :  { %v1741_v44 = vsub.f32 1.0, %v3189_v17  ;;  %v1749_v47 = vmul.f32 %v3189_v17, %v1747_v36 }
 0xeef   :  { %v1634_v19 = vpop.permute.xlu0 %1633 }
 0xef0   :  { %v1636_v16 = vmul.f32 %v3187_v15, %v1634_v19 }
 0xef2   :  { %1638 = vrot.lane.b32.xlu0 %v1636_v16, %s3355_s6 }
 0xef7   :  { %v1732_v18 = vpop.permute.xlu1 %1731 }
 0xef8   :  { %v1734_v20 = vmul.f32 %v3189_v17, %v1732_v18 }
 0xefa   :  { %1736 = vrot.lane.b32.xlu1 %v1734_v20, %s3355_s6 }
 0xf64   :  { %v1639_v22 = vpop.permute.xlu0 %1638 }
 0xf65   :  { %v1641_v23 = vadd.f32 %v1639_v22, %v1630_v21 }
 0xf67   :  { %3190 = vtanh.f32 %v1641_v23 }
 0xf6c   :  { %v1737_v26 = vpop.permute.xlu1 %1736 }
 0xf6d   :  { %v1739_v28 = vadd.f32 %v1737_v26, %v3519_v25 }
 0xf6f   :  { %3192 = vtanh.f32 %v1739_v28 }
 0xf74   :  { %v3191_v29 = vpop.eup %3190 }
 0xf75   :  { %1645 = vrot.lane.b32.xlu0 %v3191_v29, %s3357_s2 }
 0xf7c   :  { %v3193_v30 = vpop.eup %3192 }
 0xf7d   :  { %1743 = vrot.lane.b32.xlu1 %v3193_v30, %s3357_s2 }
 0xfe7   :  { %v1646_v32 = vpop.permute.xlu0 %1645 }
 0xfe8   :  { %v1648_v34 = vmul.f32 %v1646_v32, %v1643_v31 }
 0xfea   :  { %v3857_v35 = vadd.f32 %v1649_v33, %v1648_v34 }
 0xfec   :  { %1752 = vrot.lane.b32.xlu0 %v3857_v35, %s3357_s2 }
 0xfef   :  { %v1744_v46 = vpop.permute.xlu1 %1743 }
 0xff0   :  { %v1746_v49 = vmul.f32 %v1744_v46, %v1741_v44 }
 0xff2   :  { %v3862_v52 = vadd.f32 %v1749_v47, %v1746_v49  ;;  %v3229_v49 = vld [vmem:[#allocation7 + $0x18] sm:$0xff] }
 0xff4   :  { %v1827_v55 = vrot.slane %v3862_v52, 2  ;;  %v2026_v22 = vrot.slane %v3862_v52, 6  ;;  %v3230_v52 = vld [vmem:[#allocation7 + $0x10] sm:$0xff] }
 0xff6   :  { %1828 = vrot.lane.b32.xlu1 %v1827_v55, %s3357_s2  ;;  %v3231_v55 = vld [vmem:[#allocation7 + $0x8] sm:$0xff] }
0x105e   :  { %v1753_v53 = vpop.permute.xlu0 %1752 }
0x105f   :  { %3023 = vmatmul.mubr.msk.f32.vlgmr.msra.gmra.mxu1 %vm129_vm1, %v1753_v53  ;;  %v3232_v53 = vld [vmem:[#allocation7] sm:$0xff] }
0x1060   :  { %3037 = vmatpush3.msra.mxu1 %v3867_v56  ;;  %3044 = vmatprep.mubr.msk.f32.mxu1 %vm3354_vm0, %v3353_v1 }
0x1061   :  { %3038 = vmatprep.subr.mxu1 %v3353_v1 }
0x1062   :  { %3039 = vmatpush3.msra.mxu1 %v3873_v27 }
0x1063   :  { %3040 = vmatprep.subr.mxu1 %v3353_v1 }
0x1064   :  { %3041 = vmatpush3.msra.mxu1 %v3877_v58 }
0x1065   :  { %3042 = vmatprep.subr.mxu1 %v3353_v1 }
0x1066   :  { %3043 = vmatpush3.msra.mxu1 %v3881_v3 }
0x1067   :  { %3058 = vmatprep.subr.mxu1 %v3353_v1 }
0x1068   :  { %v1829_v4 = vpop.permute.xlu1 %1828 }
0x1069   :  { %3034 = vmatmul.mubr.msk.f32.vlgmr.msra.gmra.mxu0 %vm129_vm1, %v1829_v4  ;;  %3045 = vmatmul.mubr.msk.f32.vlgmr.msra.gmra.mxu1 %vm129_vm1, %v1829_v4 }
0x106a   :  { %3048 = vmatpush3.msra.mxu0 %v3527_v37  ;;  %3059 = vmatpush3.msra.mxu1 %v3532_v39 }
0x106b   :  { %3049 = vmatprep.subr.mxu0 %v3353_v1  ;;  %3060 = vmatprep.subr.mxu1 %v3353_v1 }
0x106c   :  { %3050 = vmatpush3.msra.mxu0 %v3529_v38  ;;  %3061 = vmatpush3.msra.mxu1 %v3538_v41 }
0x106d   :  { %3051 = vmatprep.subr.mxu0 %v3353_v1  ;;  %3062 = vmatprep.subr.mxu1 %v3353_v1 }
0x106e   :  { %3052 = vmatpush3.msra.mxu0 %v3535_v40  ;;  %3055 = vmatprep.mubr.msk.f32.mxu0 %vm3354_vm0, %v3353_v1 }
0x106f   :  { %3053 = vmatprep.subr.mxu0 %v3353_v1  ;;  %3063 = vmatpush3.msra.mxu1 %v3542_v42  ;;  %v3910_v42 = vld [vmem:[%s4026_s5] ss:$0 sm:$0xff] }
0x1070   :  { %3054 = vmatpush3.msra.mxu0 %v3545_v43  ;;  %3064 = vmatprep.subr.mxu1 %v3353_v1 }
0x1071   :  { %3069 = vmatprep.subr.mxu0 %v3353_v1  ;;  %3065 = vmatpush3.msra.mxu1 %v3559_v45 }
0x1072   :  { %3066 = vmatprep.mubr.msk.f32.mxu1 %vm3354_vm0, %v3353_v1  ;;  %3080 = vmatprep.subr.mxu1 %v3353_v1 }
0x111f   :  { %v1822_v37 = vpop.f32.mrf.mxu1 }
0x1121   :  { %v3024_v38 = vpop.f32.mrf.mxu1 }
0x1129   :  { %v1898_v39 = vpop.f32.mrf.mxu0  ;;  %v1996_v40 = vpop.f32.mrf.mxu1 }
0x112a   :  { %v1899_v41 = vadd.f32 %v1898_v39, %v1822_v37  ;;  %v1997_v43 = vadd.f32 %v3910_v42, %v1996_v40 }
0x112b   :  { %v3035_v6 = vpop.f32.mrf.mxu0  ;;  %v3046_v9 = vpop.f32.mrf.mxu1 }
0x112c   :  { %v2001_v45 = vrot.slane %v1997_v43, 4  ;;  %v1910_v54 = vadd.f32 %v1899_v41, %v3607_v57  ;;  %v1902_v60 = vadd.f32 %v3620_v7, %v1899_v41  ;;  %v1909_v7 = vadd.f32 %v1899_v41, %v3628_v24 }
0x112e   :  { %2010 = vrot.lane.b32.xlu1 %v2001_v45, %s3355_s6  ;;  %1912 = vrot.lane.b32.xlu0 %v1910_v54, %s3356_s4  ;;  %v2003_v61 = vadd.f32 %v2001_v45, %v3519_v25  ;;  %v2681_v62 = vmul.f32 -1.442695, %v1902_v60 }
0x1130   :  { %v2683_v63 = vmul.f32 -1.442695, %v2003_v61  ;;  %3194 = vpow2.f32 %v2681_v62 }
0x1132   :  { %3196 = vpow2.f32 %v2683_v63 }
0x113d   :  { %v3195_v0 = vpop.eup %3194 }
0x113e   :  { %v1906_v5 = vadd.f32 1.0, %v3195_v0 }
0x113f   :  { %v3197_v2 = vpop.eup %3196 }
0x1140   :  { %v2007_v8 = vadd.f32 1.0, %v3197_v2  ;;  %3198 = vrcp.f32 %v1906_v5 }
0x1142   :  { %3200 = vrcp.f32 %v2007_v8 }
0x114d   :  { %v3199_v10 = vpop.eup %3198 }
0x114e   :  { %v1922_v28 = vsub.f32 1.0, %v3199_v10  ;;  %v1928_v32 = vmul.f32 %v3199_v10, %v3857_v35 }
0x114f   :  { %v3201_v11 = vpop.eup %3200 }
0x1150   :  { %v2020_v23 = vsub.f32 1.0, %v3201_v11  ;;  %v2028_v29 = vmul.f32 %v3201_v11, %v2026_v22 }
0x11a0   :  { %v2011_v12 = vpop.permute.xlu1 %2010  ;;  %v1913_v13 = vpop.permute.xlu0 %1912 }
0x11a1   :  { %v2013_v14 = vmul.f32 %v3201_v11, %v2011_v12  ;;  %v1915_v15 = vmul.f32 %v3199_v10, %v1913_v13 }
0x11a3   :  { %2015 = vrot.lane.b32.xlu1 %v2013_v14, %s3355_s6  ;;  %1917 = vrot.lane.b32.xlu0 %v1915_v15, %s3355_s6 }
0x1215   :  { %v2016_v19 = vpop.permute.xlu1 %2015  ;;  %v1918_v16 = vpop.permute.xlu0 %1917 }
0x1216   :  { %v2018_v17 = vadd.f32 %v2016_v19, %v3519_v25  ;;  %v1920_v18 = vadd.f32 %v1918_v16, %v1909_v7 }
0x1218   :  { %3202 = vtanh.f32 %v2018_v17 }
0x1219   :  { %3204 = vtanh.f32 %v1920_v18 }
0x1225   :  { %v3203_v20 = vpop.eup %3202 }
0x1226   :  { %v3205_v21 = vpop.eup %3204  ;;  %2022 = vrot.lane.b32.xlu1 %v3203_v20, %s3357_s2 }
0x1227   :  { %1924 = vrot.lane.b32.xlu0 %v3205_v21, %s3357_s2 }
0x1298   :  { %v2023_v26 = vpop.permute.xlu1 %2022 }
0x1299   :  { %v2025_v30 = vmul.f32 %v2023_v26, %v2020_v23  ;;  %v1925_v31 = vpop.permute.xlu0 %1924 }
0x129a   :  { %v1927_v33 = vmul.f32 %v1925_v31, %v1922_v28 }
0x129b   :  { %v3926_v34 = vadd.f32 %v2028_v29, %v2025_v30 }
0x129c   :  { %v3928_v36 = vadd.f32 %v1928_v32, %v1927_v33 }
0x129d   :  { %v2106_v44 = vrot.slane %v3926_v34, 4  ;;  %v2305_v28 = vrot.slane %v3926_v34, 6 }
0x129e   :  { %2031 = vrot.lane.b32.xlu0 %v3928_v36, %s3357_s2 }
0x129f   :  { %2107 = vrot.lane.b32.xlu1 %v2106_v44, %s3357_s2 }
0x1310   :  { %v2032_v46 = vpop.permute.xlu0 %2031 }
0x1311   :  { %3056 = vmatmul.mubr.msk.f32.vlgmr.msra.gmra.mxu0 %vm129_vm1, %v2032_v46  ;;  %v2108_v47 = vpop.permute.xlu1 %2107 }
0x1312   :  { %3070 = vmatpush3.msra.mxu0 %v3867_v56  ;;  %3067 = vmatmul.mubr.msk.f32.vlgmr.msra.gmra.mxu1 %vm129_vm1, %v2108_v47  ;;  %v3233_v56 = vld [vmem:[#allocation5 + $0x18] sm:$0xff] }
0x1313   :  { %3071 = vmatprep.subr.mxu0 %v3353_v1  ;;  %3077 = vmatprep.mubr.msk.f32.mxu0 %vm3354_vm0, %v3353_v1 }
0x1314   :  { %3072 = vmatpush3.msra.mxu0 %v3873_v27  ;;  %3081 = vmatpush3.msra.mxu1 %v3229_v49  ;;  %v3234_v27 = vld [vmem:[#allocation5 + $0x10] sm:$0xff] }
0x1315   :  { %3073 = vmatprep.subr.mxu0 %v3353_v1  ;;  %3082 = vmatprep.subr.mxu1 %v3353_v1 }
0x1316   :  { %3074 = vmatpush3.msra.mxu0 %v3877_v58  ;;  %3083 = vmatpush3.msra.mxu1 %v3230_v52  ;;  %v3235_v58 = vld [vmem:[#allocation5 + $0x8] sm:$0xff] }
0x1317   :  { %3075 = vmatprep.subr.mxu0 %v3353_v1  ;;  %3084 = vmatprep.subr.mxu1 %v3353_v1 }
0x1318   :  { %3076 = vmatpush3.msra.mxu0 %v3881_v3  ;;  %3085 = vmatpush3.msra.mxu1 %v3231_v55  ;;  %v3236_v3 = vld [vmem:[#allocation5] sm:$0xff] }
0x1319   :  { %3078 = vmatmul.mubr.msk.f32.vlgmr.msra.gmra.mxu0 %vm129_vm1, %v2108_v47  ;;  %3086 = vmatprep.subr.mxu1 %v3353_v1 }
0x131a   :  { %3087 = vmatpush3.msra.mxu1 %v3232_v53  ;;  %3088 = vmatprep.mubr.msk.f32.mxu1 %vm3354_vm0, %v3353_v1 }
0x131b   :  { %3091 = vmatprep.subr.mxu0 %v3353_v1  ;;  %3099 = vmatprep.mubr.msk.f32.mxu0 %vm3354_vm0, %v3353_v1 }
0x131c   :  { %3092 = vmatpush3.msra.mxu0 %v3233_v56 }
0x131d   :  { %3093 = vmatprep.subr.mxu0 %v3353_v1 }
0x131e   :  { %3094 = vmatpush3.msra.mxu0 %v3234_v27 }
0x131f   :  { %3095 = vmatprep.subr.mxu0 %v3353_v1 }
0x1320   :  { %3096 = vmatpush3.msra.mxu0 %v3235_v58 }
0x1321   :  { %3097 = vmatprep.subr.mxu0 %v3353_v1  ;;  %v3237_v1 = vld [vmem:[%s4029_s8] ss:$0 sm:$0xff]  ;;  %s3358_s8 = smov [#allocation10]  }
0x1322   :  { %3098 = vmatpush3.msra.mxu0 %v3236_v3  ;;  %s2626_s21 = sshll.u32 %s3358_s8, 4  ;;  %s2627_s21 = int_to_ptr.vmem [resolvable:$true] %s2626_s21 }
0x1323   :  { %s3318_s22 = scalar_lea.vmem %s2627_s21, 64  ;;  %p3323_p7 = scmp.lt.s32.totalorder %s2627_s21, %s2627_s21 }
0x1324   :  { %p3319_p6 = scmp.ne.s32.totalorder %s2627_s21, %s3318_s22  ;;  %p3324_p8 = scmp.lt.s32.totalorder %s3318_s22, %s3318_s22 }
0x1326   :  { %p3325_p9 = por %p3324_p8, %p3323_p7 }
0x1328   :  { %p3326_p10 = pnand %p3325_p9, %p3319_p6 }
0x13d1   :  { %v2101_v4 = vpop.f32.mrf.mxu0 }
0x13d2   :  { %v2177_v37 = vpop.f32.mrf.mxu1 }
0x13d3   :  { %v3057_v38 = vpop.f32.mrf.mxu0  ;;  %v2178_v39 = vadd.f32 %v2177_v37, %v2101_v4  ;;  %v2488_v37 = vrot.slane %v3690_v51, 6 }
0x13d4   :  { %v3068_v40 = vpop.f32.mrf.mxu1 }
0x13d5   :  { %v2189_v41 = vadd.f32 %v2178_v39, %v3607_v57  ;;  %v2181_v54 = vadd.f32 %v3237_v1, %v2178_v39  ;;  %v2188_v14 = vadd.f32 %v2178_v39, %v3628_v24  ;;  %v2490_v39 = vrot.slane %v3745_v50, 4 }
0x13d7   :  { %2191 = vrot.lane.b32.xlu1 %v2189_v41, %s3356_s4  ;;  %v2686_v60 = vmul.f32 -1.442695, %v2181_v54  ;;  %v2492_v41 = vrot.slane %v3805_v59, 2 }
0x13d9   :  { %v2275_v43 = vpop.f32.mrf.mxu0  ;;  %3206 = vpow2.f32 %v2686_v60  ;;  %v2511_v60 = vld [vmem:[#allocation8 + $0x8] sm:$0xff] }
0x13da   :  { %v2276_v6 = vadd.f32 %v3910_v42, %v2275_v43 }
0x13db   :  { %v3079_v9 = vpop.f32.mrf.mxu0 }
0x13dc   :  { %v2280_v45 = vrot.slane %v2276_v6, 2 }
0x13de   :  { %2289 = vrot.lane.b32.xlu0 %v2280_v45, %s3355_s6  ;;  %v2282_v61 = vadd.f32 %v2280_v45, %v3519_v25 }
0x13e0   :  { %v2688_v62 = vmul.f32 -1.442695, %v2282_v61 }
0x13e2   :  { %3208 = vpow2.f32 %v2688_v62 }
0x13e6   :  { %v3207_v63 = vpop.eup %3206 }
0x13e7   :  { %v2185_v0 = vadd.f32 1.0, %v3207_v63  ;;  %v2494_v63 = vrot.slane %v3928_v36, 6 }
0x13e9   :  { %3210 = vrcp.f32 %v2185_v0 }
0x13ef   :  { %v3209_v2 = vpop.eup %3208 }
0x13f0   :  { %v2286_v42 = vadd.f32 1.0, %v3209_v2 }
0x13f2   :  { %3212 = vrcp.f32 %v2286_v42 }
0x13f6   :  { %v3211_v5 = vpop.eup %3210 }
0x13f7   :  { %v2201_v20 = vsub.f32 1.0, %v3211_v5  ;;  %v2207_v22 = vmul.f32 %v3211_v5, %v3928_v36 }
0x13ff   :  { %v3213_v11 = vpop.eup %3212 }
0x1400   :  { %v2307_v30 = vmul.f32 %v3213_v11, %v2305_v28 }
0x1449   :  { %v2192_v8 = vpop.permute.xlu1 %2191 }
0x144a   :  { %v2194_v10 = vmul.f32 %v3211_v5, %v2192_v8 }
0x144c   :  { %2196 = vrot.lane.b32.xlu1 %v2194_v10, %s3355_s6  ;;  %v2507_v10 = vsel %vm2501_vm4, %v3857_v35, %v2494_v63 }
0x1450   :  { %v2290_v12 = vpop.permute.xlu0 %2289 }
0x1451   :  { %v2292_v13 = vmul.f32 %v3213_v11, %v2290_v12 }
0x1453   :  { %2294 = vrot.lane.b32.xlu0 %v2292_v13, %s3355_s6 }
0x14be   :  { %v2197_v15 = vpop.permute.xlu1 %2196 }
0x14bf   :  { %v2199_v7 = vadd.f32 %v2197_v15, %v2188_v14 }
0x14c1   :  { %3214 = vtanh.f32 %v2199_v7 }
0x14c5   :  { %v2295_v19 = vpop.permute.xlu0 %2294 }
0x14c6   :  { %v2297_v16 = vadd.f32 %v2295_v19, %v3519_v25  ;;  %v2299_v25 = vsub.f32 1.0, %v3213_v11 }
0x14c8   :  { %3216 = vtanh.f32 %v2297_v16 }
0x14ce   :  { %v3215_v17 = vpop.eup %3214 }
0x14cf   :  { %2203 = vrot.lane.b32.xlu1 %v3215_v17, %s3357_s2 }
0x14d5   :  { %v3217_v18 = vpop.eup %3216 }
0x14d6   :  { %2301 = vrot.lane.b32.xlu0 %v3217_v18, %s3357_s2 }
0x1541   :  { %v2204_v21 = vpop.permute.xlu1 %2203 }
0x1542   :  { %v2206_v23 = vmul.f32 %v2204_v21, %v2201_v20 }
0x1544   :  { %v3972_v26 = vadd.f32 %v2207_v22, %v2206_v23 }
0x1546   :  { %2310 = vrot.lane.b32.xlu0 %v3972_v26, %s3357_s2  ;;  %v2496_v42 = vrot.slane %v3972_v26, 4 }
0x1548   :  { %v2302_v29 = vpop.permute.xlu0 %2301  ;;  %v2508_v11 = vsel %vm2503_vm5, %v2507_v10, %v2496_v42 }
0x1549   :  { %v2304_v31 = vmul.f32 %v2302_v29, %v2299_v25 }
0x154b   :  { %v2308_v32 = vadd.f32 %v2307_v30, %v2304_v31 }
0x154d   :  { %v2385_v33 = vrot.slane %v2308_v32, 6 }
0x154f   :  { %2386 = vrot.lane.b32.xlu1 %v2385_v33, %s3357_s2 }
0x15b8   :  { %v2311_v44 = vpop.permute.xlu0 %2310 }
0x15b9   :  { %3089 = vmatmul.mubr.msk.f32.vlgmr.msra.gmra.mxu1 %vm129_vm1, %v2311_v44 }
0x15c1   :  { %v2387_v46 = vpop.permute.xlu1 %2386 }
0x15c2   :  { %3100 = vmatmul.mubr.msk.f32.vlgmr.msra.gmra.mxu0 %vm129_vm1, %v2387_v46 }
0x1679   :  { %v2380_v47 = vpop.f32.mrf.mxu1 }
0x167b   :  { %v3090_v49 = vpop.f32.mrf.mxu1 }
0x1682   :  { %v2456_v52 = vpop.f32.mrf.mxu0 }
0x1683   :  { %v2457_v55 = vadd.f32 %v2456_v52, %v2380_v47 }
0x1684   :  { %v3101_v53 = vpop.f32.mrf.mxu0 }
0x1685   :  { %v2468_v34 = vadd.f32 %v2457_v55, %v3607_v57  ;;  %v2460_v56 = vadd.f32 %v3237_v1, %v2457_v55  ;;  %v2502_v57 = vsel %vm2501_vm4, %v3635_v48, %v2488_v37  ;;  %v2467_v51 = vadd.f32 %v2457_v55, %v3628_v24  ;;  %v2513_v48 = vld [vmem:[#allocation8 + $0x18] sm:$0xff]  ;;  %v2512_v1 = vld [vmem:[#allocation8 + $0x10] sm:$0xff]  ;;  %v2510_v24 = vld [vmem:[#allocation8] sm:$0xff] }
0x1686   :  { %v2504_v43 = vsel %vm2503_vm5, %v2502_v57, %v2490_v39  ;;  %3102 = vmatprep.subr.mxu1 %v2513_v48 }
0x1687   :  { %2470 = vrot.lane.b32.xlu0 %v2468_v34, %s3356_s4  ;;  %v2691_v27 = vmul.f32 -1.442695, %v2460_v56  ;;  %v2506_v6 = vsel %vm2505_vm6, %v2504_v43, %v2492_v41  ;;  %3103 = vmatpush3.msra.mxu1 %v2513_v48 }
0x1688   :  { %3104 = vmatprep.subr.mxu1 %v2512_v1 }
0x1689   :  { %3218 = vpow2.f32 %v2691_v27  ;;  %3105 = vmatpush3.msra.mxu1 %v2512_v1 }
0x168a   :  { %3106 = vmatprep.subr.mxu1 %v2511_v60 }
0x168b   :  { %3107 = vmatpush3.msra.mxu1 %v2511_v60 }
0x168c   :  { %3108 = vmatprep.subr.mxu1 %v2510_v24 }
0x168d   :  { %3109 = vmatpush3.msra.mxu1 %v2510_v24 }
0x1696   :  { %v3219_v58 = vpop.eup %3218 }
0x1697   :  { %v2464_v3 = vadd.f32 1.0, %v3219_v58 }
0x1699   :  { %3220 = vrcp.f32 %v2464_v3 }
0x16a6   :  { %v3221_v4 = vpop.eup %3220 }
0x16a7   :  { %v2480_v61 = vsub.f32 1.0, %v3221_v4  ;;  %v2486_v0 = vmul.f32 %v3221_v4, %v3972_v26 }
0x16f9   :  { %v2471_v38 = vpop.permute.xlu0 %2470 }
0x16fa   :  { %v2473_v40 = vmul.f32 %v3221_v4, %v2471_v38 }
0x16fc   :  { %2475 = vrot.lane.b32.xlu1 %v2473_v40, %s3355_s6 }
0x1700   :  { %2523 = vrot.lane.b32.xlu1 %v2506_v6, %s3357_s2 }
0x1704   :  { %2608 = vrot.lane.b32.xlu1 %v2308_v32, %s3357_s2 }
0x176e   :  { %v2476_v50 = vpop.permute.xlu1 %2475 }
0x176f   :  { %v2478_v9 = vadd.f32 %v2476_v50, %v2467_v51 }
0x1771   :  { %3222 = vtanh.f32 %v2478_v9 }
0x1772   :  { %v2524_v59 = vpop.permute.xlu1 %2523 }
0x1773   :  { %3110 = vmatprep.mubr.msk.f32.mxu1 %vm129_vm1, %v2524_v59 }
0x1776   :  { %v2609_v45 = vpop.permute.xlu1 %2608 }
0x1777   :  { %2612 = vst.msk [vmem:[#allocation10 - $0x6] sm:$0xc0] %vm2611_vm7, %v2609_v45 }
0x177e   :  { %v3223_v54 = vpop.eup %3222 }
0x177f   :  { %2482 = vrot.lane.b32.xlu0 %v3223_v54, %s3357_s2 }
0x17f1   :  { %v2483_v62 = vpop.permute.xlu0 %2482 }
0x17f2   :  { %v2485_v2 = vmul.f32 %v2483_v62, %v2480_v61 }
0x17f4   :  { %v2487_v5 = vadd.f32 %v2486_v0, %v2485_v2 }
0x17f6   :  { %v2499_v8 = vrot.slane %v2487_v5, 2 }
0x17f8   :  { %v2509_v12 = vsel %vm2505_vm6, %v2508_v11, %v2499_v8 }
0x17f9   :  { %2525 = vrot.lane.b32.xlu0 %v2509_v12, %s3357_s2 }
0x17fd   :  { %2613 = vrot.lane.b32.xlu0 %v2487_v5, %s3357_s2 }
0x186b   :  { %v2526_v13 = vpop.permute.xlu0 %2525 }
0x186c   :  { %3111 = vmatmul.mubr.msk.f32.vlgmr.msra.gmra.mxu1 %vm129_vm1, %v2526_v13 }
0x186f   :  { %v2614_v36 = vpop.permute.xlu0 %2613 }
0x1870   :  { %2618 = vst.msk [vmem:[#allocation10 + $0x2] sm:$0x3] %vm2617_vm8, %v2614_v36 }
0x1871   :  { %3329 = shalt.err (!%p3326_p10)
}
0x1872   :  { %s3359_s0 = smov 2   ;;  %v2692_v35 = vld [vmem:[%s4033_s12] ss:$0 sm:$0xff] }
0x1873   :  { %2632 = dma.vmem_to_hbm [thread:$0]  %s2627_s21, 64, %s4035_s14, [#allocation4], %s3356_s4, %s3356_s4, %s3359_s0  }
0x192c   :  { %v3112_v14 = vpop.f32.mrf.mxu1 }
0x192d   :  { %v2603_v15 = vadd.f32 %v3112_v14, %v2692_v35 }
0x192e   :  { %v2597_v7 = vpop.f32.mrf.mxu1 }
0x192f   :  { %2607 = vst.msk [vmem:[%s4034_s13 + $0x8] sm:$0xff] %vm129_vm1, %v2603_v15  ;;  %v2598_v19 = vadd.f32 %v2692_v35, %v2597_v7 }
0x1931   :  { %2606 = vst.msk [vmem:[%s4034_s13] sm:$0xff] %vm129_vm1, %v2598_v19 }
0x1932   :  { %3344 = dma.done.wait [#allocation4], 64  }
0x1933   :  { %3345 = vsyncadd [#allocation4], 4294967232 }
0x1934   :  { %2638 = vsyncpa [#allocation3], 1 }
0x1935   :  { %2639 = vsyncpa [#allocation6], 1 }
0x1936   :  { %2640 = vsyncpa [#allocation9], 1 }
0x1937   :  { %2641 = vsyncpa [#allocation4], 1 }

</bundles_post_ra>
